<compile_context>
chip_gen: v7x
topology: tpu7x:2x2x1
jax: 0.10.0
libtpu: 0.0.40
codegen_flags: <defaults>
</compile_context>

<pallas_src>
import jax
import jax.numpy as jnp
from jax.experimental import pallas as pl
from jax.experimental.pallas import tpu as pltpu


def _normalize(v, axis, eps=1e-12):
    # F.normalize: v / max(||v||_2, eps) along `axis`, in f32.
    n = jnp.sqrt(jnp.sum(v * v, axis=axis, keepdims=True))
    return v / jnp.maximum(n, eps)


# ---------------------------------------------------------------------------
# Pallas kernel: dense (1x1-conv) path + per-image spatial mean.
# ---------------------------------------------------------------------------
def _make_dense_kernel(mlp, Bt, HW, fuse_out_transpose):
    def kernel(x_ref, *refs):
        if mlp:
            (ck_w, ck_b, c1_w, c1_b, c2_w, c2_b,
             y_ref, xmean_ref, davg_ref) = refs
        else:
            (c1_w, c1_b, c2_w, c2_b, y_ref, xmean_ref, davg_ref) = refs
        wdt = c1_w.dtype

        x3 = x_ref[...]                                   # (Bt, C_in, HW) bf16
        C_in = x3.shape[1]

        # Global-path input: adaptive avg pool (1,1) == per-image spatial mean
        # (accumulated in f32); consumed by the XLA-side MLP in the wrapper.
        xmean_ref[...] = jnp.mean(x3.astype(jnp.float32), axis=2)[:, None, :]

        # 1x1 convs as one fat channels-last matmul per layer: transpose the
        # block on the XLU so the MXU sees M = Bt*HW rows.
        x = jnp.transpose(x3, (0, 2, 1)).reshape(Bt * HW, C_in)

        def layer(a, w_ref, b_ref, relu):
            o = jnp.dot(a, w_ref[...], preferred_element_type=jnp.float32)
            o = o + b_ref[...]
            return jnp.maximum(o, 0.0) if relu else o

        h = x
        if mlp:
            h = layer(h, ck_w, ck_b, True).astype(wdt)    # carry bf16 activations
        h = layer(h, c1_w, c1_b, True).astype(wdt)
        y = layer(h, c2_w, c2_b, False)                   # (Bt*HW, C_out) f32

        y3 = y.reshape(Bt, HW, y.shape[-1])
        # avgpool2: dense-feature spatial mean. Full-block store.
        davg_ref[...] = jnp.mean(y3, axis=1)[:, None, :]
        if fuse_out_transpose:
            y_ref[...] = jnp.transpose(y3, (0, 2, 1))     # (Bt, C_out, HW)
        else:
            y_ref[...] = y3                               # (Bt, HW, C_out)

    return kernel


# ---------------------------------------------------------------------------
# Sizing / hardware policy.
# ---------------------------------------------------------------------------
def _vmem_capacity_bytes():
    # Generation-aware budget; falls back to the most conservative capacity
    # (v7x: 64 MiB per TensorCore) if the query is unavailable.
    try:
        return int(pltpu.get_tpu_info().vmem_capacity_bytes)
    except Exception:
        return 64 << 20


def _footprint_bytes(Bt, HW, C_in, hid, C_out, w_bytes, n_wbuf):
    x_blk = Bt * C_in * HW * 2                 # bf16 input block
    y_blk = Bt * C_out * HW * 4                # f32 dense-output block
    small = Bt * (C_in + C_out) * 4            # pooled outputs
    # Rough in-kernel temps: bf16+f32 input views, per-layer activations, y.
    inter = Bt * HW * (6 * C_in + 8 * hid + 8 * C_out)
    return n_wbuf * w_bytes + 2 * (x_blk + y_blk + small) + inter


def _pick_batch_tile(B, HW, C_in, hid, C_out, w_bytes, n_wbuf, budget,
                     multi_core):
    def fits(d):
        return _footprint_bytes(d, HW, C_in, hid, C_out, w_bytes,
                                n_wbuf) <= budget

    divs = [d for d in range(1, B + 1) if B % d == 0 and fits(d)]
    if not divs:
        return 1
    if multi_core:
        # Keep an even number of >=2 grid steps so both v7x TCs stay busy.
        even = [d for d in divs if (B // d) >= 2 and (B // d) % 2 == 0]
        if even:
            return max(even)
        multi = [d for d in divs if (B // d) >= 2]
        if multi:
            return max(multi)
    return max(divs)


_BUFFERED1_OK = None


def _single_buffer_supported():
    """One-time probe: does this JAX accept pipeline_mode=pl.Buffered(1)?

    Constant-index weight blocks are never re-fetched, so one VMEM buffer is
    enough; we probe on a trivial kernel instead of wrapping the real
    pallas_call in a broad try/except (previous review concern)."""
    global _BUFFERED1_OK
    if _BUFFERED1_OK is not None:
        return _BUFFERED1_OK
    ok = False
    if hasattr(pl, "Buffered"):
        try:
            def probe(w_ref, x_ref, o_ref):
                o_ref[...] = x_ref[...] + w_ref[...]

            out = pl.pallas_call(
                probe,
                out_shape=jax.ShapeDtypeStruct((16, 128), jnp.float32),
                grid=(2,),
                in_specs=[pl.BlockSpec((8, 128), lambda i: (0, 0),
                                       pipeline_mode=pl.Buffered(1)),
                          pl.BlockSpec((8, 128), lambda i: (i, 0))],
                out_specs=pl.BlockSpec((8, 128), lambda i: (i, 0)),
            )(jnp.ones((8, 128), jnp.float32),
              jnp.zeros((16, 128), jnp.float32))
            jax.block_until_ready(out)
            ok = True
        except Exception:   # feature probe only; the real kernel never falls back
            ok = False
    _BUFFERED1_OK = ok
    return ok


# ---------------------------------------------------------------------------
# pallas_call wrapper for the dense path.
# ---------------------------------------------------------------------------
def _run_dense_pallas(x, conv_prepped, *, mlp, Bt, fuse_out_transpose,
                      single_buffer, vmem_limit):
    B, C_in, HW = x.shape
    C_out = conv_prepped[-2].shape[-1]
    grid = (B // Bt,)

    def const_spec(p):
        idx = lambda b: (0, 0)                      # all params are 2-D
        if single_buffer:
            return pl.BlockSpec(p.shape, idx, pipeline_mode=pl.Buffered(1))
        return pl.BlockSpec(p.shape, idx)

    in_specs = [pl.BlockSpec((Bt, C_in, HW), lambda b: (b, 0, 0))]
    in_specs += [const_spec(p) for p in conv_prepped]

    if fuse_out_transpose:
        y_shape = (B, C_out, HW)
        y_spec = pl.BlockSpec((Bt, C_out, HW), lambda b: (b, 0, 0))
    else:
        y_shape = (B, HW, C_out)
        y_spec = pl.BlockSpec((Bt, HW, C_out), lambda b: (b, 0, 0))

    out_shape = (
        jax.ShapeDtypeStruct(y_shape, jnp.float32),       # dense features
        jax.ShapeDtypeStruct((B, 1, C_in), jnp.float32),  # spatial mean of x
        jax.ShapeDtypeStruct((B, 1, C_out), jnp.float32), # dense avgpool
    )
    out_specs = [
        y_spec,
        pl.BlockSpec((Bt, 1, C_in), lambda b: (b, 0, 0)),
        pl.BlockSpec((Bt, 1, C_out), lambda b: (b, 0, 0)),
    ]

    return pl.pallas_call(
        _make_dense_kernel(mlp, Bt, HW, fuse_out_transpose),
        out_shape=out_shape,
        grid_spec=pltpu.PrefetchScalarGridSpec(
            num_scalar_prefetch=0,
            grid=grid,
            in_specs=in_specs,
            out_specs=out_specs),
        compiler_params=pltpu.CompilerParams(
            dimension_semantics=("parallel",),
            vmem_limit_bytes=int(vmem_limit)),
    )(x, *conv_prepped)


# ---------------------------------------------------------------------------
# Global (avgpool -> mlp_kept/mlp_drop) path: a few rows, run once in XLA.
# ---------------------------------------------------------------------------
def _global_path(g, lin_params, *, mlp, normlinear, weight_dtype):
    def mm(a, w):
        return jnp.dot(a.astype(weight_dtype), w.astype(weight_dtype),
                       preferred_element_type=jnp.float32)

    def lin(v, w, b):
        if normlinear:
            # NormedLinear: normalize(x, dim=1) @ normalize(W, dim=0); no bias.
            return mm(_normalize(v, axis=1), _normalize(w, axis=0))
        return mm(v, w) + b.reshape(1, -1)

    if mlp:
        lk_w, lk_b, l1_w, l1_b, l2_w, l2_b = lin_params
        g = jnp.maximum(lin(g, lk_w, lk_b), 0.0)
    else:
        l1_w, l1_b, l2_w, l2_b = lin_params
    g = jnp.maximum(lin(g, l1_w, l1_b), 0.0)
    return lin(g, l2_w, l2_b)


# ---------------------------------------------------------------------------
# Public forward.
# ---------------------------------------------------------------------------
def densecl_forward(x_nchw, params, *, mlp=True, normlinear=False,
                    weight_dtype=jnp.bfloat16, batch_tile=None):
    """DenseCL forward. Returns [avgpool_x, x_dense, dense_avgpool_x].

    params (weights stored (in, out), 1-D biases):
      mlp=True : (ck_w, ck_b, c1_w, c1_b, c2_w, c2_b,   # mlp2_kept / mlp2_drop
                  lk_w, lk_b, l1_w, l1_b, l2_w, l2_b)   # mlp_kept  / mlp_drop
      mlp=False: (c1_w, c1_b, c2_w, c2_b, l1_w, l1_b, l2_w, l2_b)
    """
    B, C_in, H, W = x_nchw.shape
    HW = H * W

    n_conv = 6 if mlp else 4
    conv_params, lin_params = params[:n_conv], params[n_conv:]

    # NCHW -> (B, C_in, HW) is a free reshape; the channels-last transpose the
    # matmuls need happens in-kernel.  Activations travel HBM->VMEM in bf16.
    x = x_nchw.reshape(B, C_in, HW).astype(weight_dtype)

    conv_prepped = []
    for i, p in enumerate(conv_params):
        if i % 2 == 0:
            conv_prepped.append(p.astype(weight_dtype))          # weights
        else:
            conv_prepped.append(p.reshape(1, -1).astype(jnp.float32))  # biases

    hid = conv_prepped[-2].shape[0]
    C_out = conv_prepped[-2].shape[-1]
    w_bytes = sum(int(p.size) * p.dtype.itemsize for p in conv_prepped)

    single_buffer = _single_buffer_supported()
    n_wbuf = 1 if single_buffer else 2

    capacity = _vmem_capacity_bytes()
    multi_core = capacity <= (96 << 20)     # v7x-like: 64 MiB / TC, 2 TCs/chip
    budget = int(0.70 * capacity)

    if batch_tile is not None:
        Bt = int(batch_tile)
        assert B % Bt == 0
    else:
        Bt = _pick_batch_tile(B, HW, C_in, hid, C_out, w_bytes, n_wbuf,
                              budget, multi_core)

    fuse_out_transpose = (HW % 128 == 0)    # lane-dense (.., C_out, HW) writes

    need = _footprint_bytes(Bt, HW, C_in, hid, C_out, w_bytes, n_wbuf)
    vmem_limit = min(int(0.85 * capacity), max(int(1.5 * need), 32 << 20))

    y_dense, xmean, davg = _run_dense_pallas(
        x, conv_prepped, mlp=mlp, Bt=Bt,
        fuse_out_transpose=fuse_out_transpose,
        single_buffer=single_buffer, vmem_limit=vmem_limit)

    # Global path: M = B rows -> run once in XLA instead of per grid step.
    avgpool_x = _global_path(xmean[:, 0, :], lin_params, mlp=mlp,
                             normlinear=normlinear, weight_dtype=weight_dtype)

    x_out = y_dense if fuse_out_transpose else jnp.transpose(y_dense, (0, 2, 1))
    return [avgpool_x, x_out, davg[:, 0, :]]


# ---------------------------------------------------------------------------
# Pure-JAX reference with the same numerics (bf16 matmul inputs, f32 accum).
# ---------------------------------------------------------------------------
def densecl_ref(x_nchw, params, *, mlp=True, normlinear=False,
                weight_dtype=jnp.bfloat16):
    B, C_in, H, W = x_nchw.shape
    n_conv = 6 if mlp else 4
    conv_p, lin_p = params[:n_conv], params[n_conv:]

    def mm(a, w):
        return jnp.dot(a.astype(weight_dtype), w.astype(weight_dtype),
                       preferred_element_type=jnp.float32)

    def lin(v, w, b):
        if normlinear:
            return mm(_normalize(v, axis=1), _normalize(w, axis=0))
        return mm(v, w) + b.reshape(1, -1)

    xq = x_nchw.astype(weight_dtype).astype(jnp.float32)
    g = jnp.mean(xq, axis=(2, 3))                              # (B, C_in)
    if mlp:
        lk_w, lk_b, l1_w, l1_b, l2_w, l2_b = lin_p
        g = jnp.maximum(lin(g, lk_w, lk_b), 0.0)
    else:
        l1_w, l1_b, l2_w, l2_b = lin_p
    g = jnp.maximum(lin(g, l1_w, l1_b), 0.0)
    g = lin(g, l2_w, l2_b)

    xc = jnp.transpose(x_nchw, (0, 2, 3, 1)).reshape(B, H * W, C_in)
    h = xc
    if mlp:
        ck_w, ck_b, c1_w, c1_b, c2_w, c2_b = conv_p
        h = jnp.maximum(mm(h, ck_w) + ck_b.reshape(1, -1), 0.0)
    else:
        c1_w, c1_b, c2_w, c2_b = conv_p
    h = jnp.maximum(mm(h, c1_w) + c1_b.reshape(1, -1), 0.0)
    y = mm(h, c2_w) + c2_b.reshape(1, -1)                      # (B, HW, C_out)
    davg = jnp.mean(y, axis=1)
    return [g, jnp.transpose(y, (0, 2, 1)), davg]


if __name__ == "__main__":
    B, C_in, HID, C_out, H, W = 2, 32, 64, 32, 16, 16
    key = jax.random.PRNGKey(0)
    keys = jax.random.split(key, 13)
    x = jax.random.normal(keys[0], (B, C_in, H, W), jnp.float32)

    def init_w(k, i, o):
        return jax.random.normal(k, (i, o), jnp.float32) * 0.1

    def init_b(k, o):
        return jax.random.normal(k, (o,), jnp.float32) * 0.01

    params = (
        # mlp2_kept / mlp2_drop (1x1 conv weights stored as (in, out))
        init_w(keys[1], C_in, HID), init_b(keys[2], HID),
        init_w(keys[3], HID, HID), init_b(keys[4], HID),
        init_w(keys[5], HID, C_out), init_b(keys[6], C_out),
        # mlp_kept / mlp_drop (linear weights stored as (in, out))
        init_w(keys[7], C_in, HID), init_b(keys[8], HID),
        init_w(keys[9], HID, HID), init_b(keys[10], HID),
        init_w(keys[11], HID, C_out), init_b(keys[12], C_out),
    )

    for normlinear in (False, True):
        outs = densecl_forward(x, params, mlp=True, normlinear=normlinear)
        outs = [jax.block_until_ready(o) for o in outs]
        refs = densecl_ref(x, params, mlp=True, normlinear=normlinear)
        assert len(outs) == 3
        for o, r in zip(outs, refs):
            assert o.shape == r.shape, (o.shape, r.shape)
            assert jnp.allclose(o, r, atol=2e-3, rtol=2e-3), normlinear

    print("KERNEL_OK")
</pallas_src>

<mosaic_0001>
module attributes {stable_mosaic.version = 11 : i64} {
  func.func @probe(%arg0: i32, %arg1: memref<8x128xf32, #tpu.memory_space<vmem>>, %arg2: memref<8x128xf32, #tpu.memory_space<vmem>>, %arg3: memref<8x128xf32, #tpu.memory_space<vmem>>) attributes {dimension_semantics = [#tpu.dimension_semantics<arbitrary>], iteration_bounds = array<i64: 2>, scalar_prefetch = 0 : i64, scratch_operands = 0 : i64, tpu.core_type = #tpu.core_type<tc>, window_params = [{pipeline_mode = #tpu.pipeline_mode<synchronous>, transform_indices = @transform_0, window_bounds = array<i64: 8, 128>}, {transform_indices = @transform_1, window_bounds = array<i64: 8, 128>}, {transform_indices = @transform_2, window_bounds = array<i64: 8, 128>}]} {
    %c0 = arith.constant 0 : index
    %c0_0 = arith.constant 0 : index
    %0 = vector.load %arg2[%c0, %c0_0] : memref<8x128xf32, #tpu.memory_space<vmem>>, vector<8x128xf32>
    %c0_1 = arith.constant 0 : index
    %c0_2 = arith.constant 0 : index
    %1 = vector.load %arg1[%c0_1, %c0_2] : memref<8x128xf32, #tpu.memory_space<vmem>>, vector<8x128xf32>
    %2 = arith.addf %0, %1 : vector<8x128xf32>
    %c0_3 = arith.constant 0 : index
    %c0_4 = arith.constant 0 : index
    %3 = vector.load %arg3[%c0_3, %c0_4] : memref<8x128xf32, #tpu.memory_space<vmem>>, vector<8x128xf32>
    tpu.vector_store %arg3[%c0_3, %c0_4], %2 {strides = array<i32>} : memref<8x128xf32, #tpu.memory_space<vmem>>, vector<8x128xf32>,
    return
  }
  func.func @transform_0(%arg0: i32) -> (i32, i32) {
    %c0_i32 = arith.constant 0 : i32
    %c0_i32_0 = arith.constant 0 : i32
    %c0_i32_1 = arith.constant 0 : i32
    return %c0_i32, %c0_i32_0 : i32, i32
  }
  func.func @transform_1(%arg0: i32) -> (i32, i32) {
    %c0_i32 = arith.constant 0 : i32
    %c0_i32_0 = arith.constant 0 : i32
    return %arg0, %c0_i32 : i32, i32
  }
  func.func @transform_2(%arg0: i32) -> (i32, i32) {
    %c0_i32 = arith.constant 0 : i32
    %c0_i32_0 = arith.constant 0 : i32
    return %arg0, %c0_i32 : i32, i32
  }
}

module attributes {stable_mosaic.version = 11 : i64} {
  func.func @kernel(%arg0: i32, %arg1: memref<1x32x256xbf16, #tpu.memory_space<vmem>>, %arg2: memref<32x64xbf16, #tpu.memory_space<vmem>>, %arg3: memref<1x64xf32, #tpu.memory_space<vmem>>, %arg4: memref<64x64xbf16, #tpu.memory_space<vmem>>, %arg5: memref<1x64xf32, #tpu.memory_space<vmem>>, %arg6: memref<64x32xbf16, #tpu.memory_space<vmem>>, %arg7: memref<1x32xf32, #tpu.memory_space<vmem>>, %arg8: memref<1x32x256xf32, #tpu.memory_space<vmem>>, %arg9: memref<1x1x32xf32, #tpu.memory_space<vmem>>, %arg10: memref<1x1x32xf32, #tpu.memory_space<vmem>>) attributes {dimension_semantics = [#tpu.dimension_semantics<parallel>], iteration_bounds = array<i64: 2>, scalar_prefetch = 0 : i64, scratch_operands = 0 : i64, tpu.core_type = #tpu.core_type<tc>, window_params = [{transform_indices = @transform_0, window_bounds = array<i64: 1, 32, 256>}, {pipeline_mode = #tpu.pipeline_mode<synchronous>, transform_indices = @transform_1, window_bounds = array<i64: 32, 64>}, {pipeline_mode = #tpu.pipeline_mode<synchronous>, transform_indices = @transform_2, window_bounds = array<i64: 1, 64>}, {pipeline_mode = #tpu.pipeline_mode<synchronous>, transform_indices = @transform_3, window_bounds = array<i64: 64, 64>}, {pipeline_mode = #tpu.pipeline_mode<synchronous>, transform_indices = @transform_4, window_bounds = array<i64: 1, 64>}, {pipeline_mode = #tpu.pipeline_mode<synchronous>, transform_indices = @transform_5, window_bounds = array<i64: 64, 32>}, {pipeline_mode = #tpu.pipeline_mode<synchronous>, transform_indices = @transform_6, window_bounds = array<i64: 1, 32>}, {transform_indices = @transform_7, window_bounds = array<i64: 1, 32, 256>}, {transform_indices = @transform_8, window_bounds = array<i64: 1, 1, 32>}, {transform_indices = @transform_9, window_bounds = array<i64: 1, 1, 32>}]} {
    %c0 = arith.constant 0 : index
    %c0_0 = arith.constant 0 : index
    %c0_1 = arith.constant 0 : index
    %0 = vector.load %arg1[%c0, %c0_0, %c0_1] : memref<1x32x256xbf16, #tpu.memory_space<vmem>>, vector<1x32x256xbf16>
    %1 = arith.extf %0 : vector<1x32x256xbf16> to vector<1x32x256xf32>
    %cst = arith.constant dense<0.000000e+00> : vector<1x32xf32>
    %2 = vector.multi_reduction <add>, %1, %cst [2] : vector<1x32x256xf32> to vector<1x32xf32>
    %cst_2 = arith.constant 2.560000e+02 : f32
    %3 = vector.broadcast %cst_2 : f32 to vector<1x32xf32>
    %4 = arith.divf %2, %3 : vector<1x32xf32>
    %5 = vector.shape_cast %4 : vector<1x32xf32> to vector<1x1x32xf32>
    %c0_3 = arith.constant 0 : index
    %c0_4 = arith.constant 0 : index
    %c0_5 = arith.constant 0 : index
    %6 = vector.load %arg9[%c0_3, %c0_4, %c0_5] : memref<1x1x32xf32, #tpu.memory_space<vmem>>, vector<1x1x32xf32>
    tpu.vector_store %arg9[%c0_3, %c0_4, %c0_5], %5 {strides = array<i32>} : memref<1x1x32xf32, #tpu.memory_space<vmem>>, vector<1x1x32xf32>,
    %7 = tpu.transpose %0, [0, 2, 1] : vector<1x32x256xbf16> -> vector<1x256x32xbf16>
    %8 = vector.shape_cast %7 : vector<1x256x32xbf16> to vector<256x32xbf16>
    %c0_6 = arith.constant 0 : index
    %c0_7 = arith.constant 0 : index
    %9 = vector.load %arg2[%c0_6, %c0_7] : memref<32x64xbf16, #tpu.memory_space<vmem>>, vector<32x64xbf16>
    %cst_8 = arith.constant dense<0.000000e+00> : vector<256x64xf32>
    %10 = tpu.matmul %8, %9, %cst_8 {dimension_numbers = #tpu.dot_dimension_numbers<[1], [0], [0], [1], [0, 0, 1, 1], [], []>} : vector<256x32xbf16>, vector<32x64xbf16>, vector<256x64xf32> -> vector<256x64xf32>
    %c0_9 = arith.constant 0 : index
    %c0_10 = arith.constant 0 : index
    %11 = vector.load %arg3[%c0_9, %c0_10] : memref<1x64xf32, #tpu.memory_space<vmem>>, vector<1x64xf32>
    %12 = vector.broadcast %11 : vector<1x64xf32> to vector<256x64xf32>
    %13 = arith.addf %10, %12 : vector<256x64xf32>
    %cst_11 = arith.constant 0.000000e+00 : f32
    %14 = vector.broadcast %cst_11 : f32 to vector<256x64xf32>
    %15 = arith.maximumf %13, %14 : vector<256x64xf32>
    %16 = arith.truncf %15 : vector<256x64xf32> to vector<256x64xbf16>
    %c0_12 = arith.constant 0 : index
    %c0_13 = arith.constant 0 : index
    %17 = vector.load %arg4[%c0_12, %c0_13] : memref<64x64xbf16, #tpu.memory_space<vmem>>, vector<64x64xbf16>
    %cst_14 = arith.constant dense<0.000000e+00> : vector<256x64xf32>
    %18 = tpu.matmul %16, %17, %cst_14 {dimension_numbers = #tpu.dot_dimension_numbers<[1], [0], [0], [1], [0, 0, 1, 1], [], []>} : vector<256x64xbf16>, vector<64x64xbf16>, vector<256x64xf32> -> vector<256x64xf32>
    %c0_15 = arith.constant 0 : index
    %c0_16 = arith.constant 0 : index
    %19 = vector.load %arg5[%c0_15, %c0_16] : memref<1x64xf32, #tpu.memory_space<vmem>>, vector<1x64xf32>
    %20 = vector.broadcast %19 : vector<1x64xf32> to vector<256x64xf32>
    %21 = arith.addf %18, %20 : vector<256x64xf32>
    %cst_17 = arith.constant 0.000000e+00 : f32
    %22 = vector.broadcast %cst_17 : f32 to vector<256x64xf32>
    %23 = arith.maximumf %21, %22 : vector<256x64xf32>
    %24 = arith.truncf %23 : vector<256x64xf32> to vector<256x64xbf16>
    %c0_18 = arith.constant 0 : index
    %c0_19 = arith.constant 0 : index
    %25 = vector.load %arg6[%c0_18, %c0_19] : memref<64x32xbf16, #tpu.memory_space<vmem>>, vector<64x32xbf16>
    %cst_20 = arith.constant dense<0.000000e+00> : vector<256x32xf32>
    %26 = tpu.matmul %24, %25, %cst_20 {dimension_numbers = #tpu.dot_dimension_numbers<[1], [0], [0], [1], [0, 0, 1, 1], [], []>} : vector<256x64xbf16>, vector<64x32xbf16>, vector<256x32xf32> -> vector<256x32xf32>
    %c0_21 = arith.constant 0 : index
    %c0_22 = arith.constant 0 : index
    %27 = vector.load %arg7[%c0_21, %c0_22] : memref<1x32xf32, #tpu.memory_space<vmem>>, vector<1x32xf32>
    %28 = vector.broadcast %27 : vector<1x32xf32> to vector<256x32xf32>
    %29 = arith.addf %26, %28 : vector<256x32xf32>
    %30 = vector.shape_cast %29 : vector<256x32xf32> to vector<1x256x32xf32>
    %cst_23 = arith.constant dense<0.000000e+00> : vector<1x32xf32>
    %31 = vector.multi_reduction <add>, %30, %cst_23 [1] : vector<1x256x32xf32> to vector<1x32xf32>
    %cst_24 = arith.constant 2.560000e+02 : f32
    %32 = vector.broadcast %cst_24 : f32 to vector<1x32xf32>
    %33 = arith.divf %31, %32 : vector<1x32xf32>
    %34 = vector.shape_cast %33 : vector<1x32xf32> to vector<1x1x32xf32>
    %c0_25 = arith.constant 0 : index
    %c0_26 = arith.constant 0 : index
    %c0_27 = arith.constant 0 : index
    %35 = vector.load %arg10[%c0_25, %c0_26, %c0_27] : memref<1x1x32xf32, #tpu.memory_space<vmem>>, vector<1x1x32xf32>
    tpu.vector_store %arg10[%c0_25, %c0_26, %c0_27], %34 {strides = array<i32>} : memref<1x1x32xf32, #tpu.memory_space<vmem>>, vector<1x1x32xf32>,
    %36 = tpu.transpose %30, [0, 2, 1] : vector<1x256x32xf32> -> vector<1x32x256xf32>
    %c0_28 = arith.constant 0 : index
    %c0_29 = arith.constant 0 : index
    %c0_30 = arith.constant 0 : index
    %37 = vector.load %arg8[%c0_28, %c0_29, %c0_30] : memref<1x32x256xf32, #tpu.memory_space<vmem>>, vector<1x32x256xf32>
    tpu.vector_store %arg8[%c0_28, %c0_29, %c0_30], %36 {strides = array<i32>} : memref<1x32x256xf32, #tpu.memory_space<vmem>>, vector<1x32x256xf32>,
    return
  }
  func.func @transform_0(%arg0: i32) -> (i32, i32, i32) {
    %c0_i32 = arith.constant 0 : i32
    %c0_i32_0 = arith.constant 0 : i32
    %c0_i32_1 = arith.constant 0 : i32
    return %arg0, %c0_i32, %c0_i32_0 : i32, i32, i32
  }
  func.func @transform_1(%arg0: i32) -> (i32, i32) {
    %c0_i32 = arith.constant 0 : i32
    %c0_i32_0 = arith.constant 0 : i32
    %c0_i32_1 = arith.constant 0 : i32
    return %c0_i32, %c0_i32_0 : i32, i32
  }
  func.func @transform_2(%arg0: i32) -> (i32, i32) {
    %c0_i32 = arith.constant 0 : i32
    %c0_i32_0 = arith.constant 0 : i32
    %c0_i32_1 = arith.constant 0 : i32
    return %c0_i32, %c0_i32_0 : i32, i32
  }
  func.func @transform_3(%arg0: i32) -> (i32, i32) {
    %c0_i32 = arith.constant 0 : i32
    %c0_i32_0 = arith.constant 0 : i32
    %c0_i32_1 = arith.constant 0 : i32
    return %c0_i32, %c0_i32_0 : i32, i32
  }
  func.func @transform_4(%arg0: i32) -> (i32, i32) {
    %c0_i32 = arith.constant 0 : i32
    %c0_i32_0 = arith.constant 0 : i32
    %c0_i32_1 = arith.constant 0 : i32
    return %c0_i32, %c0_i32_0 : i32, i32
  }
  func.func @transform_5(%arg0: i32) -> (i32, i32) {
    %c0_i32 = arith.constant 0 : i32
    %c0_i32_0 = arith.constant 0 : i32
    %c0_i32_1 = arith.constant 0 : i32
    return %c0_i32, %c0_i32_0 : i32, i32
  }
  func.func @transform_6(%arg0: i32) -> (i32, i32) {
    %c0_i32 = arith.constant 0 : i32
    %c0_i32_0 = arith.constant 0 : i32
    %c0_i32_1 = arith.constant 0 : i32
    return %c0_i32, %c0_i32_0 : i32, i32
  }
  func.func @transform_7(%arg0: i32) -> (i32, i32, i32) {
    %c0_i32 = arith.constant 0 : i32
    %c0_i32_0 = arith.constant 0 : i32
    %c0_i32_1 = arith.constant 0 : i32
    return %arg0, %c0_i32, %c0_i32_0 : i32, i32, i32
  }
  func.func @transform_8(%arg0: i32) -> (i32, i32, i32) {
    %c0_i32 = arith.constant 0 : i32
    %c0_i32_0 = arith.constant 0 : i32
    %c0_i32_1 = arith.constant 0 : i32
    return %arg0, %c0_i32, %c0_i32_0 : i32, i32, i32
  }
  func.func @transform_9(%arg0: i32) -> (i32, i32, i32) {
    %c0_i32 = arith.constant 0 : i32
    %c0_i32_0 = arith.constant 0 : i32
    %c0_i32_1 = arith.constant 0 : i32
    return %arg0, %c0_i32, %c0_i32_0 : i32, i32, i32
  }
}

</mosaic_0001>

<bundles_post_ra>
// kernel: tpu_custom_call.1
= control target key start
LH: loop header
LB: loop body
LE: loop exit
PB: predicated region body
PF: predicated region fallthrough
CT: control target
= control target key end

     0   :  { %7 = vsyncpa [#allocation3], 0  ;;  %s692_s0 = inlined_call_operand.hbm [shape: f32[8,128], index: 0, kind: input, shape index: {}]   ;;  %s693_s1 = inlined_call_operand.hbm [shape: f32[16,128], index: 1, kind: input, shape index: {}]   ;;  %s694_s2 = inlined_call_operand.hbm [shape: f32[16,128], index: 2, kind: output, shape index: {}]  }
   0x1   :  { %8 = vsyncpa [#allocation6], 0 }
   0x2   :  { %10 = vsyncpa [#allocation6 + $0x1], 0 }
   0x3   :  { %11 = vsyncpa [#allocation4], 0 }
   0x4   :  { %13 = vsyncpa [#allocation4 + $0x1], 0  ;;  %s491_s9 = smov 0   ;;  %s493_s10 = smov 0  }
   0x5   :  { %s495_s11 = smov 0   ;;  %s497_s12 = smov 0  }
   0x6 LB: > { %s512_s13 = sadd.s32 4294967295, %s471_s12   ;;  %s272_s14 = sadd.s32 4294967294, %s471_s12   ;;  %s471_s12 = sphi %s497_s12, %s718_s12   ;;  %s467_s11 = sphi %s495_s11, %s717_s11   ;;  %s463_s10 = sphi %s493_s10, %s716_s10   ;;  %s459_s9 = sphi %s491_s9, %s715_s9  }
   0x7   : > { %p60_p0 = scmp.ne.s32.totalorder %s463_s10, %s459_s9  ;;  %p695_p1 = scmp.eq.s32.totalorder %s512_s13, 0 }
   0x8   : > { %p90_p3 = scmp.eq.s32.totalorder %s272_s14, 1  ;;  %p273_p5 = scmp.ge.s32.totalorder %s471_s12, 1 }
   0x9   : > { %p521_p4 = por %p695_p1, %p60_p0  ;;  %p97_p7 = scmp.lt.s32.totalorder %s471_s12, 3 }
   0xa   : > { %p526_p6 = por %p90_p3, %p60_p0  ;;  %s473_s18 = smov [#allocation2]  }
   0xb   : > { %s698_s15 = scalar_select %p521_p4, 1, 0 }
   0xc   : > { %s699_s16 = scalar_select %p526_p6, 1, 0 }
   0xd   : > { %p531_p8 = pnand %p273_p5, %p97_p7  ;;  %s110_s19 = sshll.u32 %s473_s18, 4  ;;  %s111_s19 = int_to_ptr.vmem [resolvable:$true] %s110_s19 }
   0xe   : > { %s539_s20 = sadd.s32 1, %s471_s12   ;;  %s47_s24 = sadd.s32 1, %s467_s11 }
   0xf   : > { %s700_s17 = scalar_select %p531_p8, 1, 0 }
  0x10   : > { %p294_p10 = pneg %p531_p8  ;;  %s44_s22 = ssub.s32 %s471_s12, %s539_s20 }
  0x11   : > { %p549_p12 = scmp.eq.s32.totalorder %s44_s22, 0  ;;  %s343_s27 = scalar_lea.hbm %s692_s0, 128 }
  0x12   : > { %p543_p11 = pnand %p294_p10, %p695_p1  ;;  %p344_p0 = scmp.ne.s32.totalorder %s692_s0, %s343_s27 }
  0x13   : > { %s702_s23 = scalar_select %p549_p12, 1, 0 }
  0x14   : > { %p345_p3 = pneg %p543_p11  ;;  %p350_p10 = scmp.lt.u32.totalorder %s343_s27, %s692_s0 }
  0x16   : > { %p346_p5 = pnand %p345_p3, %p344_p0 }
  0x18   : > { %p347_p7 = pneg %p346_p5 }
  0x1a   : > { %p352_p9 = pnand %p350_p10, %p347_p7 }
  0x1c   : > { %355 = shalt.err (!%p352_p9)
}
  0x1d   : > { %s356_s4 = scalar_lea.vmem %s111_s19, 128  ;;  %p364_p6 = scmp.lt.s32.totalorder %s111_s19, %s111_s19 }
  0x1e   : > { %p357_p1 = scmp.ne.s32.totalorder %s111_s19, %s356_s4  ;;  %p365_p4 = scmp.lt.s32.totalorder %s356_s4, %s356_s4 }
  0x20   : > { %p359_p2 = pnand %p357_p1, %p345_p3  ;;  %p366_p8 = por %p365_p4, %p364_p6 }
  0x22   : > { %p360_p13 = pneg %p359_p2 }
  0x24   : > { %p367_p12 = pnand %p366_p8, %p360_p13 }
  0x26   : > { %370 = shalt.err (!%p367_p12)
}
  0x27   : > { %297 = dma.hbm_to_vmem [thread:$0]  (!%p543_p11), %s692_s0, 128, %s111_s19, [#allocation3]  }
  0x28   : > { %p703_p1 = scmp.ne.s32.totalorder %s702_s23, 0  ;;  %p55_p2 = scmp.eq.s32.totalorder %s471_s12, 0 }
  0x29   : > { %p704_p4 = scmp.ne.s32.totalorder %s467_s11, %s463_s10  ;;  %p705_p6 = scmp.eq.s32.totalorder %s512_s13, 1 }
  0x2a   : > { %s575_s7 = scalar_select %p703_p1, %s467_s11, %s47_s24  }
  0x2b   : > { %p583_p8 = por %p705_p6, %p704_p4  ;;  %p307_p9 = scmp.lt.s32.totalorder %s471_s12, 2 }
  0x2c   : > { %s121_s14 = sand.u32 1, %s467_s11   ;;  %p707_p12 = pmov %p704_p4 }
  0x2d   : > { %s276_s18 = sshll.u32 %s121_s14, 3  ;;  %s277_s21 = sshll.u32 %s471_s12, 7 }
  0x2e   : > { %p56_p13 = por %p55_p2, %p707_p12  ;;  %s596_s19 = scalar_lea.hbm %s693_s1, %s277_s21 }
  0x2f   : > { %s125_s23 = scalar_lea.vmem [#allocation5], %s276_s18  ;;  %s122_s27 = scalar_lea.sflag [#allocation6], %s121_s14 }
  0x30   : > { %s132_s24 = sshll.u32 %s125_s23, 4  ;;  %p598_p11 = pnand %p307_p9, %p56_p13  ;;  %s602_s24 = int_to_ptr.vmem [resolvable:$true] %s132_s24 }
  0x31   : > { %s371_s28 = scalar_lea.hbm %s596_s19, 128  ;;  %s376_s3 = scalar_lea.hbm %s693_s1, 256 }
  0x32   : > { %p372_p0 = scmp.ne.s32.totalorder %s596_s19, %s371_s28  ;;  %p373_p3 = pneg %p598_p11 }
  0x33   : > { %p377_p10 = scmp.lt.u32.totalorder %s596_s19, %s693_s1  ;;  %p378_p1 = scmp.lt.u32.totalorder %s376_s3, %s371_s28 }
  0x34   : > { %p374_p5 = pnand %p373_p3, %p372_p0  ;;  %p380_p4 = scmp.lt.u32.totalorder %s371_s28, %s596_s19 }
  0x35   : > { %p379_p2 = por %p378_p1, %p377_p10 }
  0x36   : > { %p375_p7 = pneg %p374_p5 }
  0x37   : > { %p381_p6 = por %p380_p4, %p379_p2 }
  0x39   : > { %p382_p9 = pnand %p381_p6, %p375_p7 }
  0x3b   : > { %385 = shalt.err (!%p382_p9)
}
  0x3c   : > { %s386_s6 = scalar_lea.vmem %s602_s24, 128  ;;  %s474_s14 = smov [#allocation5]  }
  0x3d   : > { %p387_p12 = scmp.ne.s32.totalorder %s602_s24, %s386_s6  ;;  %s391_s18 = sshll.u32 %s474_s14, 4  ;;  %s392_s18 = int_to_ptr.vmem [resolvable:$false] %s391_s18 }
  0x3e   : > { %s393_s21 = scalar_lea.vmem %s392_s18, 256  ;;  %p394_p5 = scmp.lt.s32.totalorder %s602_s24, %s392_s18 }
  0x3f   : > { %p389_p13 = pnand %p387_p12, %p373_p3  ;;  %p395_p10 = scmp.lt.s32.totalorder %s393_s21, %s386_s6 }
  0x41   : > { %p390_p0 = pneg %p389_p13  ;;  %p396_p1 = por %p395_p10, %p394_p5 }
  0x43   : > { %p397_p2 = pnand %p396_p1, %p390_p0 }
  0x45   : > { %400 = shalt.err (!%p397_p2)
}
  0x46   : > { %301 = dma.hbm_to_vmem [thread:$0]  (!%p598_p11), %s596_s19, 128, %s602_s24, %s122_s27  }
  0x47   : > { %p709_p7 = scmp.ne.s32.totalorder %s700_s17, 0 }
  0x48   : > { %p710_p3 = scmp.eq.s32.totalorder (!%p709_p7), %s512_s13, 0 }
  0x49   : > { %141 = sbr.rel (%p709_p7) target bundleno = 110 (0x6e), region = 28 }
  0x50   : > { %446 = dma.done.wait (%p710_p3), [#allocation3], 128   ;;  %p711_p4 = pmov %p710_p3 }
  0x51   : > { %s636_s22 = sand.u32 1, %s463_s10   ;;  %p712_p6 = scmp.ne.s32.totalorder %s698_s15, 0 }
  0x52   : > { %448 = vsyncadd (%p711_p4), [#allocation3], 4294967168  ;;  %s280_s25 = sshll.u32 %s636_s22, 3  ;;  %s148_s23 = scalar_lea.sflag [#allocation6], %s636_s22 }
  0x53   : > { %s151_s26 = scalar_lea.vmem [#allocation5], %s280_s25 }
  0x54   : > { %450 = dma.done.wait (%p712_p6), %s148_s23, 128  }
  0x55   : > { %452 = vsyncadd (%p712_p6), %s148_s23, 4294967168  ;;  %s171_s17 = scalar_lea.vmem [#allocation7], %s280_s25  ;;  %s283_s24 = sshll.u32 %s512_s13, 7  ;;  %v172_v0 = vld [vmem:[%s151_s26] sm:$0xff]  ;;  %v173_v1 = vld [vmem:[#allocation2] sm:$0xff] }
  0x56   : > { %s190_s19 = sshll.u32 %s171_s17, 4  ;;  %v174_v2 = vadd.f32 %v173_v1, %v172_v0  ;;  %s650_s29 = scalar_lea.hbm %s694_s2, %s283_s24  ;;  %s645_s19 = int_to_ptr.vmem [resolvable:$true] %s190_s19 }
  0x57   : > { %s177_s15 = scalar_lea.sflag [#allocation4], %s636_s22  ;;  %s401_s30 = scalar_lea.vmem %s645_s19, 128 }
  0x58   : > { %175 = vst [vmem:[%s171_s17] sm:$0xff] %v174_v2  ;;  %p402_p11 = scmp.ne.s32.totalorder %s645_s19, %s401_s30  ;;  %s475_s13 = smov [#allocation7]  }
  0x59   : > { %s405_s3 = sshll.u32 %s475_s13, 4  ;;  %s406_s3 = int_to_ptr.vmem [resolvable:$false] %s405_s3 }
  0x5a   : > { %p403_p9 = pnand %p402_p11, %p583_p8  ;;  %s407_s4 = scalar_lea.vmem %s406_s3, 256 }
  0x5b   : > { %p408_p13 = scmp.lt.s32.totalorder %s645_s19, %s406_s3  ;;  %p409_p0 = scmp.lt.s32.totalorder %s407_s4, %s401_s30 }
  0x5c   : > { %p404_p12 = pneg %p403_p9 }
  0x5d   : > { %p410_p5 = por %p409_p0, %p408_p13 }
  0x5f   : > { %p411_p10 = pnand %p410_p5, %p404_p12 }
  0x61   : > { %414 = shalt.err (!%p411_p10)
}
  0x62   : > { %s415_s5 = scalar_lea.hbm %s650_s29, 128  ;;  %s419_s18 = scalar_lea.hbm %s694_s2, 256 }
  0x63   : > { %p416_p1 = scmp.ne.s32.totalorder %s650_s29, %s415_s5  ;;  %p420_p3 = scmp.lt.u32.totalorder %s650_s29, %s694_s2 }
  0x64   : > { %p421_p4 = scmp.lt.u32.totalorder %s419_s18, %s415_s5  ;;  %p423_p11 = scmp.lt.u32.totalorder %s415_s5, %s650_s29 }
  0x65   : > { %p417_p2 = pnand %p416_p1, %p583_p8 }
  0x66   : > { %p422_p6 = por %p421_p4, %p420_p3 }
  0x67   : > { %p418_p7 = pneg %p417_p2 }
  0x68   : > { %p424_p9 = por %p423_p11, %p422_p6 }
  0x6a   : > { %p425_p12 = pnand %p424_p9, %p418_p7 }
  0x6c   : > { %428 = shalt.err (!%p425_p12)
}
  0x6d   : > { %292 = dma.vmem_to_hbm [thread:$0]  (%p583_p8), %s645_s19, 128, %s650_s29, %s177_s15  }
  0x6e PF: > { %s202_s25 = sand.u32 1, %s459_s9   ;;  %p713_p13 = scmp.ne.s32.totalorder %s699_s16, 0 }
  0x6f   : > { %p714_p0 = scmp.ge.s32.totalorder %s471_s12, 2  ;;  %s203_s23 = scalar_lea.sflag [#allocation4], %s202_s25 }
  0x71   : > { %p303_p5 = pnand %p714_p0, %p713_p13 }
  0x73   : > { %454 = dma.done.wait (!%p303_p5), %s203_s23, 128  }
  0x74   : > { %456 = vsyncadd (!%p303_p5), %s203_s23, 4294967168  ;;  %p16_p10 = scmp.ge.s32.totalorder %s539_s20, 4   ;;  %s715_s9 = smov %s463_s10 }
  0x75   : > { %s716_s10 = smov %s467_s11  ;;  %s717_s11 = smov %s575_s7 }
  0x76   : > { %s718_s12 = smov %s539_s20  ;;  %18 = sbr.rel (!%p16_p10) target bundleno = 6 (0x6), region = 78 }
  0x7d   :  { %208 = vsyncpa [#allocation3], 1 }
  0x7e   :  { %210 = vsyncpa [#allocation3 + $0x1], 1 }
  0x7f   :  { %211 = vsyncpa [#allocation6], 1 }
  0x80   :  { %213 = vsyncpa [#allocation6 + $0x1], 1 }
  0x81   :  { %214 = vsyncpa [#allocation4], 1 }
  0x82   :  { %216 = vsyncpa [#allocation4 + $0x1], 1 }

// kernel: tpu_custom_call.1
= control target key start
LH: loop header
LB: loop body
LE: loop exit
PB: predicated region body
PF: predicated region fallthrough
CT: control target
= control target key end

     0   :  { %15 = vsyncpa [#allocation3], 0  ;;  %s2712_s0 = inlined_call_operand.hbm [shape: bf16[2,32,256], index: 0, kind: input, shape index: {}]   ;;  %s2713_s1 = inlined_call_operand.vmem [shape: bf16[32,64], index: 1, kind: input, shape index: {}]   ;;  %s2714_s2 = inlined_call_operand.vmem [shape: f32[1,64], index: 2, kind: input, shape index: {}]   ;;  %s2715_s3 = inlined_call_operand.vmem [shape: bf16[64,64], index: 3, kind: input, shape index: {}]   ;;  %s2716_s4 = inlined_call_operand.vmem [shape: f32[1,64], index: 4, kind: input, shape index: {}]   ;;  %s2717_s5 = inlined_call_operand.vmem [shape: bf16[64,32], index: 5, kind: input, shape index: {}]   ;;  %s2718_s6 = inlined_call_operand.vmem [shape: f32[1,32], index: 6, kind: input, shape index: {}]   ;;  %s2719_s7 = inlined_call_operand.hbm [shape: f32[2,32,256], index: 7, kind: output, shape index: {0}]   ;;  %s2720_s8 = inlined_call_operand.hbm [shape: f32[2,1,32], index: 8, kind: output, shape index: {1}]   ;;  %s2721_s9 = inlined_call_operand.hbm [shape: f32[2,1,32], index: 9, kind: output, shape index: {2}]  }
   0x1   :  { %17 = vsyncpa [#allocation3 + $0x1], 0 }
   0x2   :  { %18 = vsyncpa [#allocation4], 0 }
   0x3   :  { %20 = vsyncpa [#allocation4 + $0x1], 0 }
   0x4   :  { %21 = vsyncpa [#allocation7], 0 }
   0x5   :  { %23 = vsyncpa [#allocation7 + $0x1], 0  ;;  %s2178_s30 = smov 0   ;;  %s2180_s10 = smov 0  }
   0x6   :  { %s2182_s11 = smov 0   ;;  %s2184_s12 = smov 0  }
   0x7 LB: > { %s2199_s13 = sadd.s32 4294967295, %s2118_s12   ;;  %s2722_s14 = sadd.s32 4294967294, %s2118_s12   ;;  %s2118_s12 = sphi %s2184_s12, %s2738_s12   ;;  %s2114_s11 = sphi %s2182_s11, %s2737_s11   ;;  %s2110_s10 = sphi %s2180_s10, %s2736_s10   ;;  %s2106_s30 = sphi %s2178_s30, %s2735_s30  }
   0x8   : > { %s2203_s15 = sadd.s32 1, %s2118_s12   ;;  %s36_s16 = sadd.s32 1, %s2114_s11 }
   0x9   : > { %s33_s17 = ssub.s32 %s2118_s12, %s2203_s15  ;;  %p43_p0 = scmp.ne.s32.totalorder %s2114_s11, %s2110_s10 }
   0xa   : > { %p34_p1 = scmp.eq.s32.totalorder %s33_s17, 0  ;;  %p44_p2 = scmp.eq.s32.totalorder %s2118_s12, 0 }
   0xb   : > { %p49_p3 = scmp.ne.s32.totalorder %s2110_s10, %s2106_s30  ;;  %p50_p4 = scmp.eq.s32.totalorder %s2199_s13, 0 }
   0xc   : > { %s2215_s18 = scalar_select %p34_p1, %s2114_s11, %s36_s16  }
   0xd   : > { %p2217_p5 = por %p44_p2, %p43_p0  ;;  %p2221_p6 = por %p50_p4, %p49_p3 }
   0xe   : > { %p199_p7 = scmp.eq.s32.totalorder %s2199_s13, 1  ;;  %p205_p8 = scmp.eq.s32.totalorder %s2722_s14, 1 }
   0xf   : > { %p1909_p10 = scmp.lt.s32.totalorder %s2118_s12, 2  ;;  %s295_s23 = sand.u32 1, %s2114_s11  }
  0x10   : > { %p2230_p11 = por %p199_p7, %p43_p0  ;;  %p2234_p12 = por %p205_p8, %p49_p3 }
  0x11   : > { %s1707_s24 = sshll.u32 %s2118_s12, 9  ;;  %s1629_s25 = sshll.u32 %s295_s23, 5 }
  0x12   : > { %s2727_s21 = scalar_select %p2230_p11, 1, 0 }
  0x13   : > { %s2728_s22 = scalar_select %p2234_p12, 1, 0 }
  0x14   : > { %s2243_s28 = scalar_lea.hbm %s2712_s0, %s1707_s24  ;;  %s299_s29 = scalar_lea.vmem [#allocation2], %s1629_s25 }
  0x15   : > { %s306_s16 = sshll.u32 %s299_s29, 4  ;;  %p2247_p13 = pnand %p1909_p10, %p2217_p5  ;;  %s2251_s16 = int_to_ptr.vmem [resolvable:$true] %s306_s16 }
  0x16   : > { %s2253_s14 = scalar_lea.sflag [#allocation3], %s295_s23  ;;  %s1962_s26 = scalar_lea.hbm %s2243_s28, 512 }
  0x17   : > { %p1963_p0 = scmp.ne.s32.totalorder %s2243_s28, %s1962_s26  ;;  %p1964_p1 = pneg %p2247_p13 }
  0x18   : > { %s1967_s25 = scalar_lea.hbm %s2712_s0, 1024  ;;  %p1968_p4 = scmp.lt.u32.totalorder %s2243_s28, %s2712_s0 }
  0x19   : > { %p1965_p2 = pnand %p1964_p1, %p1963_p0  ;;  %p1969_p5 = scmp.lt.u32.totalorder %s1967_s25, %s1962_s26 }
  0x1a   : > { %p1971_p8 = scmp.lt.u32.totalorder %s1962_s26, %s2243_s28 }
  0x1b   : > { %p1966_p3 = pneg %p1965_p2  ;;  %p1970_p7 = por %p1969_p5, %p1968_p4 }
  0x1d   : > { %p1972_p10 = por %p1971_p8, %p1970_p7 }
  0x1f   : > { %p1973_p9 = pnand %p1972_p10, %p1966_p3 }
  0x21   : > { %1976 = shalt.err (!%p1973_p9)
}
  0x22   : > { %s1977_s23 = scalar_lea.vmem %s2251_s16, 512  ;;  %s2120_s24 = smov [#allocation2]  }
  0x23   : > { %p1978_p0 = scmp.ne.s32.totalorder %s2251_s16, %s1977_s23  ;;  %s1982_s19 = sshll.u32 %s2120_s24, 4  ;;  %s1983_s19 = int_to_ptr.vmem [resolvable:$false] %s1982_s19 }
  0x24   : > { %s1984_s27 = scalar_lea.vmem %s1983_s19, 1024  ;;  %p1985_p11 = scmp.lt.s32.totalorder %s2251_s16, %s1983_s19 }
  0x25   : > { %p1980_p2 = pnand %p1978_p0, %p1964_p1  ;;  %p1986_p4 = scmp.lt.s32.totalorder %s1984_s27, %s1977_s23 }
  0x27   : > { %p1981_p12 = pneg %p1980_p2  ;;  %p1987_p5 = por %p1986_p4, %p1985_p11 }
  0x29   : > { %p1988_p7 = pnand %p1987_p5, %p1981_p12 }
  0x2b   : > { %1991 = shalt.err (!%p1988_p7)
}
  0x2c   : > { %s2121_s26 = smov 128   ;;  %s2122_s25 = smov 8  }
  0x2d   : > { %1898 = dma.hbm_to_vmem [thread:$0]  (!%p2247_p13), %s2243_s28, 512, %s2251_s16, %s2253_s14, %s2121_s26, %s2121_s26, %s2122_s25  }
  0x2e   : > { %p1632_p9 = scmp.ge.s32.totalorder %s2118_s12, 1  ;;  %p314_p1 = scmp.lt.s32.totalorder %s2118_s12, 3 }
  0x30   : > { %p315_p3 = pnand %p1632_p9, %p314_p1 }
  0x31   : > { %s2284_s29 = sand.u32 (!%p315_p3), 1, %s2110_s10  }
  0x32   : > { %318 = sbr.rel (%p315_p3) target bundleno = 1036 (0x40c), region = 48  ;;  %s1633_s23 = sshll.u32 (!%p315_p3), %s2284_s29, 5 }
  0x33   : > { %s321_s24 = scalar_lea.sflag (!%p315_p3), [#allocation3], %s2284_s29  ;;  %s324_s19 = scalar_lea.vmem (!%p315_p3), [#allocation2], %s1633_s23 }
  0x39   : > { %2093 = dma.done.wait (%p2221_p6), %s321_s24, 512  }
  0x3a   : > { %2095 = vsyncadd (%p2221_p6), %s321_s24, 4294966784  ;;  %v2292_v0 = vld [vmem:[%s324_s19] sm:$0xff]  ;;  %v2294_v1 = vld [vmem:[%s324_s19 + $0x8] sm:$0xff]  ;;  %vm506_vm0 = vcmask 261120   ;;  %vm803_vm1 = vcmask 523264   ;;  %vm412_vm2 = vcmask 130112  }
  0x3b   : > { %v2296_v2 = vld [vmem:[%s324_s19 + $0x10] sm:$0xff]  ;;  %v1635_v3 = vcombine.low %v2292_v0, %v2294_v1  ;;  %v2300_v4 = vld [vmem:[%s324_s19 + $0x18] sm:$0xff]  ;;  %v1636_v5 = vcombine.high %v2292_v0, %v2294_v1  ;;  %v1952_v6 = vld [vmem:[%s2713_s1] sm:$0xff]   ;;  %vm419_vm3 = vcmask 195712   ;;  %vm426_vm4 = vcmask 261312   ;;  %s360_s17 = scalar_lea.vmem [#allocation6], %s2284_s29 }
  0x3c   : > { %v1637_v7 = vcombine.low %v2296_v2, %v2300_v4  ;;  %v1638_v8 = vcombine.high %v2296_v2, %v2300_v4  ;;  %v1953_v9 = vld [vmem:[%s2713_s1 + $0x8] sm:$0xff]   ;;  %1767 = vmatprep.subr.bf16.mxu0 %v1952_v6  ;;  %1883 = vmatprep.subr.bf16.mxu1 %v1952_v6  ;;  %v1954_v10 = vld [vmem:[%s2715_s3] sm:$0xff]   ;;  %v1956_v16 = vld [vmem:[%s2715_s3 + $0x10] sm:$0xff]   ;;  %vm429_vm5 = vcmask 253952   ;;  %s1457_s27 = sand.u32 1, %s2199_s13   ;;  %s2724_s26 = sshll.u32 %s2199_s13, 4 }
  0x3d   : > { %451 = vxpose.xlu0.c.b16.start [1/2] (short) %v1635_v3, 128  ;;  %467 = vxpose.xlu1.c.b16.start [1/2] (short) %v1636_v5, 128  ;;  %v1955_v13 = vld [vmem:[%s2715_s3 + $0x8] sm:$0xff]   ;;  %v1957_v29 = vld [vmem:[%s2715_s3 + $0x18] sm:$0xff]   ;;  %v1958_v30 = vld [vmem:[%s2717_s5] sm:$0xff]   ;;  %s2564_s24 = scalar_lea.hbm %s2720_s8, %s2724_s26  ;;  %s1490_s19 = sshll.u32 %s360_s17, 4  ;;  %s2576_s19 = int_to_ptr.vmem [resolvable:$true] %s1490_s19 }
  0x3e   : > { %1768 = vmatpush3.bf16.msra.mxu0 %v1952_v6  ;;  %1885 = vmatpush3.bf16.msra.mxu1 %v1952_v6  ;;  %v1959_v31 = vld [vmem:[%s2717_s5 + $0x8] sm:$0xff]   ;;  %v1960_v32 = vld [vmem:[%s2717_s5 + $0x10] sm:$0xff]   ;;  %v2354_v33 = vld [vmem:[%s2714_s2] ss:$0 sm:$0xff]  ;;  %s2578_s14 = scalar_lea.sflag [#allocation7], %s1457_s27  ;;  %s1992_s28 = scalar_lea.vmem %s2576_s19, 16 }
  0x3f   : > { %1769 = vmatprep.subr.bf16.mxu0 %v1953_v9  ;;  %1884 = vmatprep.subr.bf16.mxu1 %v1953_v9  ;;  %p1993_p6 = scmp.ne.s32.totalorder %s2576_s19, %s1992_s28  ;;  %p2730_p11 = scmp.ne.s32.totalorder %s2727_s21, 0 }
  0x40   : > { %s2123_s20 = smov [#allocation6]  }
  0x41   : > { %452 = vxpose.xlu0.c.b16.end [2/2] (short) %v1637_v7, 128  ;;  %468 = vxpose.xlu1.c.b16.end [2/2] (short) %v1638_v8, 128  ;;  %p1994_p12 = pnand %p1993_p6, %p2730_p11  ;;  %s1996_s16 = sshll.u32 %s2123_s20, 4  ;;  %s1997_s16 = int_to_ptr.vmem [resolvable:$false] %s1996_s16 }
  0x42   : > { %1770 = vmatpush3.bf16.msra.mxu0 %v1953_v9  ;;  %1886 = vmatpush3.bf16.msra.mxu1 %v1953_v9  ;;  %p1999_p8 = scmp.lt.s32.totalorder %s2576_s19, %s1997_s16 }
  0x43   : > { %1803 = vmatprep.subr.bf16.mxu1 %v1954_v10  ;;  %1843 = vmatprep.subr.bf16.mxu0 %v1958_v30  ;;  %p1995_p13 = pneg %p1994_p12 }
  0xa3   : > { %v459_v11 = vpop.trf.xlu0  ;;  %v475_v12 = vpop.trf.xlu1 }
  0xa4   : > { %1771 = vmatprep.mubr.msk.bf16.mxu0 %vm506_vm0, %v459_v11  ;;  %1787 = vmatprep.mubr.msk.bf16.mxu1 %vm506_vm0, %v475_v12 }
  0xa7   : > { %v460_v14 = vpop.trf.xlu0  ;;  %v476_v15 = vpop.trf.xlu1 }
  0xa8   : > { %1772 = vmatmul.mubr.msk.bf16.vlgmr.msra.gmra.mrb[0].mxu0 %vm506_vm0, %v460_v14  ;;  %1788 = vmatmul.mubr.msk.bf16.vlgmr.msra.gmra.mrb[0].mxu1 %vm506_vm0, %v476_v15 }
  0xa9   : > { %1804 = vmatpush3.bf16.msra.mxu1 %v1954_v10  ;;  %1844 = vmatpush3.bf16.msra.mxu0 %v1958_v30 }
  0xaa   : > { %1805 = vmatprep.subr.bf16.mxu1 %v1955_v13  ;;  %1845 = vmatprep.subr.bf16.mxu0 %v1959_v31 }
  0xab   : > { %v461_v17 = vpop.trf.xlu0  ;;  %v477_v18 = vpop.trf.xlu1 }
  0xac   : > { %1775 = vmatprep.mubr.msk.bf16.mxu0 %vm506_vm0, %v461_v17  ;;  %1791 = vmatprep.mubr.msk.bf16.mxu1 %vm506_vm0, %v477_v18 }
  0xad   : > { %1806 = vmatpush3.bf16.msra.mxu1 %v1955_v13  ;;  %1846 = vmatpush3.bf16.msra.mxu0 %v1959_v31 }
  0xae   : > { %1807 = vmatprep.subr.bf16.mxu1 %v1956_v16  ;;  %1847 = vmatprep.subr.bf16.mxu0 %v1960_v32 }
  0xaf   : > { %v462_v19 = vpop.trf.xlu0  ;;  %v478_v20 = vpop.trf.xlu1 }
  0xb0   : > { %1776 = vmatmul.mubr.msk.bf16.gmra.mrb[4].mxu0 %vm506_vm0, %v462_v19  ;;  %1792 = vmatmul.mubr.msk.bf16.gmra.mrb[4].mxu1 %vm506_vm0, %v478_v20 }
  0xb1   : > { %1808 = vmatpush3.bf16.msra.mxu1 %v1956_v16  ;;  %1848 = vmatpush3.bf16.msra.mxu0 %v1960_v32 }
  0xb2   : > { %1809 = vmatprep.subr.bf16.mxu1 %v1957_v29 }
  0xb3   : > { %v463_v21 = vpop.trf.xlu0  ;;  %v479_v22 = vpop.trf.xlu1 }
  0xb4   : > { %1779 = vmatprep.mubr.msk.bf16.mxu0 %vm506_vm0, %v463_v21  ;;  %1795 = vmatprep.mubr.msk.bf16.mxu1 %vm506_vm0, %v479_v22 }
  0xb5   : > { %1810 = vmatpush3.bf16.msra.mxu1 %v1957_v29 }
  0xb7   : > { %v464_v23 = vpop.trf.xlu0  ;;  %v480_v24 = vpop.trf.xlu1 }
  0xb8   : > { %1780 = vmatmul.mubr.msk.bf16.gmra.mrb[8].mxu0 %vm506_vm0, %v464_v23  ;;  %1796 = vmatmul.mubr.msk.bf16.gmra.mrb[8].mxu1 %vm506_vm0, %v480_v24 }
  0xbb   : > { %v465_v25 = vpop.trf.xlu0  ;;  %v481_v26 = vpop.trf.xlu1 }
  0xbc   : > { %1783 = vmatprep.mubr.msk.bf16.mxu0 %vm506_vm0, %v465_v25  ;;  %1799 = vmatprep.mubr.msk.bf16.mxu1 %vm506_vm0, %v481_v26 }
  0xbf   : > { %v466_v27 = vpop.trf.xlu0  ;;  %v482_v28 = vpop.trf.xlu1 }
  0xc0   : > { %1784 = vmatmul.mubr.msk.bf16.gmra.mrb[12].mxu0 %vm506_vm0, %v466_v27  ;;  %1800 = vmatmul.mubr.msk.bf16.gmra.mrb[12].mxu1 %vm506_vm0, %v482_v28 }
 0x17b   : > { %v1773_v34 = vpop.f32.mrb[0].mxu0  ;;  %v1789_v35 = vpop.f32.mrb[0].mxu1 }
 0x17c   : > { %v598_v36 = vadd.f32 %v1773_v34, %v2354_v33  ;;  %v589_v37 = vpop.f32.mrb[1].mxu0  ;;  %v662_v38 = vadd.f32 %v1789_v35, %v2354_v33  ;;  %v653_v39 = vpop.f32.mrb[1].mxu1 }
 0x17d   : > { %v590_v40 = vadd.f32 %v2354_v33, %v589_v37  ;;  %v1774_v41 = vpop.f32.mrb[2].mxu0  ;;  %v654_v42 = vadd.f32 %v2354_v33, %v653_v39  ;;  %v1790_v43 = vpop.f32.mrb[2].mxu1 }
 0x17e   : > { %v601_v44 = vadd.f32 %v1774_v41, %v2354_v33  ;;  %v592_v45 = vpop.f32.mrb[3].mxu0  ;;  %v734_v46 = vmax.f32 %v662_v38, 0.0  ;;  %v665_v47 = vadd.f32 %v1790_v43, %v2354_v33  ;;  %v656_v48 = vpop.f32.mrb[3].mxu1  ;;  %v718_v52 = vmax.f32 %v598_v36, 0.0 }
 0x17f   : > { %v593_v49 = vadd.f32 %v2354_v33, %v592_v45  ;;  %v732_v50 = vmax.f32 %v654_v42, 0.0  ;;  %v657_v51 = vadd.f32 %v2354_v33, %v656_v48  ;;  %v716_v55 = vmax.f32 %v590_v40, 0.0 }
 0x180   : > { %v719_v53 = vmax.f32 %v601_v44, 0.0  ;;  %v735_v54 = vmax.f32 %v665_v47, 0.0 }
 0x181   : > { %v717_v56 = vmax.f32 %v593_v49, 0.0  ;;  %v733_v57 = vmax.f32 %v657_v51, 0.0 }
 0x182   : > { %v749_v58 = vpack.c.bf16 %v719_v53, %v718_v52  ;;  %v2364_v59 = vpack.c.bf16 %v735_v54, %v734_v46 }
 0x183   : > { %v748_v60 = vpack.c.bf16 %v717_v56, %v716_v55  ;;  %v1777_v61 = vpop.f32.mrb[4].mxu0  ;;  %v2366_v62 = vpack.c.bf16 %v733_v57, %v732_v50  ;;  %v1793_v63 = vpop.f32.mrb[4].mxu1 }
 0x184   : > { %v614_v3 = vadd.f32 %v1777_v61, %v2354_v33  ;;  %v605_v5 = vpop.f32.mrb[5].mxu0  ;;  %v678_v6 = vadd.f32 %v1793_v63, %v2354_v33  ;;  %v669_v7 = vpop.f32.mrb[5].mxu1 }
 0x185   : > { %v606_v8 = vadd.f32 %v2354_v33, %v605_v5  ;;  %v1778_v9 = vpop.f32.mrb[6].mxu0  ;;  %1811 = vmatprep.mubr.msk.bf16.mxu1 %vm803_vm1, %v748_v60  ;;  %v670_v10 = vadd.f32 %v2354_v33, %v669_v7  ;;  %v1794_v11 = vpop.f32.mrb[6].mxu1 }
 0x186   : > { %v617_v12 = vadd.f32 %v1778_v9, %v2354_v33  ;;  %v608_v13 = vpop.f32.mrb[7].mxu0  ;;  %1812 = vmatmul.mubr.msk.bf16.vlgmr.msra.gmra.mrb[16].mxu1 %vm803_vm1, %v749_v58  ;;  %v738_v14 = vmax.f32 %v678_v6, 0.0  ;;  %v681_v15 = vadd.f32 %v1794_v11, %v2354_v33  ;;  %v672_v16 = vpop.f32.mrb[7].mxu1  ;;  %v722_v20 = vmax.f32 %v614_v3, 0.0 }
 0x187   : > { %v609_v17 = vadd.f32 %v2354_v33, %v608_v13  ;;  %v736_v18 = vmax.f32 %v670_v10, 0.0  ;;  %v673_v19 = vadd.f32 %v2354_v33, %v672_v16  ;;  %v720_v23 = vmax.f32 %v606_v8, 0.0 }
 0x188   : > { %v723_v21 = vmax.f32 %v617_v12, 0.0  ;;  %v739_v22 = vmax.f32 %v681_v15, 0.0 }
 0x189   : > { %v721_v24 = vmax.f32 %v609_v17, 0.0  ;;  %v737_v25 = vmax.f32 %v673_v19, 0.0 }
 0x18a   : > { %v751_v26 = vpack.c.bf16 %v723_v21, %v722_v20  ;;  %v2378_v27 = vpack.c.bf16 %v739_v22, %v738_v14 }
 0x18b   : > { %v750_v28 = vpack.c.bf16 %v721_v24, %v720_v23  ;;  %v1781_v29 = vpop.f32.mrb[8].mxu0  ;;  %v2380_v30 = vpack.c.bf16 %v737_v25, %v736_v18  ;;  %v1797_v31 = vpop.f32.mrb[8].mxu1 }
 0x18c   : > { %v630_v32 = vadd.f32 %v1781_v29, %v2354_v33  ;;  %v621_v34 = vpop.f32.mrb[9].mxu0  ;;  %v694_v35 = vadd.f32 %v1797_v31, %v2354_v33  ;;  %v685_v36 = vpop.f32.mrb[9].mxu1  ;;  %v374_v31 = vunpack.c.l.bf16 %v2294_v1 }
 0x18d   : > { %v622_v37 = vadd.f32 %v2354_v33, %v621_v34  ;;  %v1782_v38 = vpop.f32.mrb[10].mxu0  ;;  %1815 = vmatprep.mubr.msk.bf16.mxu1 %vm803_vm1, %v750_v28  ;;  %v686_v39 = vadd.f32 %v2354_v33, %v685_v36  ;;  %v1798_v40 = vpop.f32.mrb[10].mxu1  ;;  %v378_v34 = vunpack.c.l.bf16 %v2300_v4 }
 0x18e   : > { %v633_v41 = vadd.f32 %v1782_v38, %v2354_v33  ;;  %v624_v42 = vpop.f32.mrb[11].mxu0  ;;  %1816 = vmatmul.mubr.msk.bf16.gmra.mrb[20].mxu1 %vm803_vm1, %v751_v26  ;;  %v742_v43 = vmax.f32 %v694_v35, 0.0  ;;  %v697_v44 = vadd.f32 %v1798_v40, %v2354_v33  ;;  %v688_v45 = vpop.f32.mrb[11].mxu1  ;;  %v726_v49 = vmax.f32 %v630_v32, 0.0 }
 0x18f   : > { %v625_v46 = vadd.f32 %v2354_v33, %v624_v42  ;;  %v740_v47 = vmax.f32 %v686_v39, 0.0  ;;  %v689_v48 = vadd.f32 %v2354_v33, %v688_v45  ;;  %v724_v52 = vmax.f32 %v622_v37, 0.0 }
 0x190   : > { %v727_v50 = vmax.f32 %v633_v41, 0.0  ;;  %v743_v51 = vmax.f32 %v697_v44, 0.0  ;;  %v375_v32 = vunpack.c.h.bf16 %v2294_v1  ;;  %v379_v35 = vunpack.c.h.bf16 %v2300_v4 }
 0x191   : > { %v725_v53 = vmax.f32 %v625_v46, 0.0  ;;  %v741_v54 = vmax.f32 %v689_v48, 0.0 }
 0x192   : > { %v753_v55 = vpack.c.bf16 %v727_v50, %v726_v49  ;;  %v761_v56 = vpack.c.bf16 %v743_v51, %v742_v43  ;;  %v383_v37 = vadd.f32 %v375_v32, %v374_v31  ;;  %v389_v39 = vadd.f32 %v379_v35, %v378_v34 }
 0x193   : > { %v752_v57 = vpack.c.bf16 %v725_v53, %v724_v52  ;;  %v1785_v58 = vpop.f32.mrb[12].mxu0  ;;  %v760_v60 = vpack.c.bf16 %v741_v54, %v740_v47  ;;  %v1801_v61 = vpop.f32.mrb[12].mxu1 }
 0x194   : > { %v646_v63 = vadd.f32 %v1785_v58, %v2354_v33  ;;  %v637_v3 = vpop.f32.mrb[13].mxu0  ;;  %v710_v5 = vadd.f32 %v1801_v61, %v2354_v33  ;;  %v701_v6 = vpop.f32.mrb[13].mxu1  ;;  %384 = vadd.xlane.f32.xlu1 %v383_v37 }
 0x195   : > { %v638_v7 = vadd.f32 %v2354_v33, %v637_v3  ;;  %v1786_v8 = vpop.f32.mrb[14].mxu0  ;;  %1819 = vmatprep.mubr.msk.bf16.mxu1 %vm803_vm1, %v752_v57  ;;  %v702_v9 = vadd.f32 %v2354_v33, %v701_v6  ;;  %v1802_v10 = vpop.f32.mrb[14].mxu1 }
 0x196   : > { %v649_v11 = vadd.f32 %v1786_v8, %v2354_v33  ;;  %v640_v12 = vpop.f32.mrb[15].mxu0  ;;  %1820 = vmatmul.mubr.msk.bf16.gmra.mrb[24].mxu1 %vm803_vm1, %v753_v55  ;;  %v746_v13 = vmax.f32 %v710_v5, 0.0  ;;  %v713_v14 = vadd.f32 %v1802_v10, %v2354_v33  ;;  %v704_v15 = vpop.f32.mrb[15].mxu1  ;;  %v730_v19 = vmax.f32 %v646_v63, 0.0 }
 0x197   : > { %v641_v16 = vadd.f32 %v2354_v33, %v640_v12  ;;  %v744_v17 = vmax.f32 %v702_v9, 0.0  ;;  %v705_v18 = vadd.f32 %v2354_v33, %v704_v15  ;;  %v728_v22 = vmax.f32 %v638_v7, 0.0  ;;  %v1961_v33 = vld [vmem:[%s2717_s5 + $0x18] sm:$0xff]  }
 0x198   : > { %v731_v20 = vmax.f32 %v649_v11, 0.0  ;;  %v747_v21 = vmax.f32 %v713_v14, 0.0  ;;  %1849 = vmatprep.subr.bf16.mxu0 %v1961_v33  ;;  %390 = vadd.xlane.f32.xlu1 %v389_v39 }
 0x199   : > { %v729_v23 = vmax.f32 %v641_v16, 0.0  ;;  %v745_v24 = vmax.f32 %v705_v18, 0.0  ;;  %1850 = vmatpush3.bf16.msra.mxu0 %v1961_v33 }
 0x19a   : > { %v755_v25 = vpack.c.bf16 %v731_v20, %v730_v19  ;;  %v763_v26 = vpack.c.bf16 %v747_v21, %v746_v13 }
 0x19b   : > { %v754_v28 = vpack.c.bf16 %v729_v23, %v728_v22  ;;  %v762_v29 = vpack.c.bf16 %v745_v24, %v744_v17 }
 0x19d   : > { %1823 = vmatprep.mubr.msk.bf16.mxu1 %vm803_vm1, %v754_v28 }
 0x19e   : > { %1824 = vmatmul.mubr.msk.bf16.gmra.mrb[28].mxu1 %vm803_vm1, %v755_v25 }
 0x19f   : > { %1827 = vmatprep.mubr.msk.bf16.mxu1 %vm803_vm1, %v2366_v62  ;;  %v373_v62 = vunpack.c.h.bf16 %v2292_v0 }
 0x1a6   : > { %1828 = vmatmul.mubr.msk.bf16.gmra.mrb[32].mxu1 %vm803_vm1, %v2364_v59  ;;  %v372_v59 = vunpack.c.l.bf16 %v2292_v0  ;;  %v2430_v0 = vld [vmem:[%s2716_s4] ss:$0 sm:$0xff] }
 0x1a7   : > { %1831 = vmatprep.mubr.msk.bf16.mxu1 %vm803_vm1, %v2380_v30  ;;  %v377_v30 = vunpack.c.h.bf16 %v2296_v2 }
 0x1a8   : > { %v380_v36 = vadd.f32 %v373_v62, %v372_v59 }
 0x1aa   : > { %381 = vadd.xlane.f32.xlu0 %v380_v36 }
 0x1ae   : > { %1832 = vmatmul.mubr.msk.bf16.gmra.mrb[36].mxu1 %vm803_vm1, %v2378_v27  ;;  %v376_v27 = vunpack.c.l.bf16 %v2296_v2 }
 0x1af   : > { %1835 = vmatprep.mubr.msk.bf16.mxu1 %vm803_vm1, %v760_v60 }
 0x1b0   : > { %v386_v38 = vadd.f32 %v377_v30, %v376_v27 }
 0x1b2   : > { %387 = vadd.xlane.f32.xlu0 %v386_v38 }
 0x1b6   : > { %1836 = vmatmul.mubr.msk.bf16.gmra.mrb[40].mxu1 %vm803_vm1, %v761_v56 }
 0x1b7   : > { %1839 = vmatprep.mubr.msk.bf16.mxu1 %vm803_vm1, %v762_v29 }
 0x1be   : > { %1840 = vmatmul.mubr.msk.bf16.gmra.mrb[44].mxu1 %vm803_vm1, %v763_v26 }
 0x259   : > { %v1813_v2 = vpop.f32.mrb[16].mxu1 }
 0x25a   : > { %v895_v1 = vadd.f32 %v1813_v2, %v2430_v0  ;;  %v886_v40 = vpop.f32.mrb[17].mxu1 }
 0x25b   : > { %v887_v41 = vadd.f32 %v2430_v0, %v886_v40  ;;  %v1814_v4 = vpop.f32.mrb[18].mxu1 }
 0x25c   : > { %v898_v42 = vadd.f32 %v1814_v4, %v2430_v0  ;;  %v889_v43 = vpop.f32.mrb[19].mxu1  ;;  %v1015_v45 = vmax.f32 %v895_v1, 0.0 }
 0x25d   : > { %v890_v44 = vadd.f32 %v2430_v0, %v889_v43  ;;  %v1013_v47 = vmax.f32 %v887_v41, 0.0 }
 0x25e   : > { %v1016_v46 = vmax.f32 %v898_v42, 0.0 }
 0x25f   : > { %v1014_v48 = vmax.f32 %v890_v44, 0.0 }
 0x260   : > { %v1046_v49 = vpack.c.bf16 %v1016_v46, %v1015_v45 }
 0x261   : > { %v1045_v50 = vpack.c.bf16 %v1014_v48, %v1013_v47  ;;  %v1817_v51 = vpop.f32.mrb[20].mxu1 }
 0x262   : > { %v911_v52 = vadd.f32 %v1817_v51, %v2430_v0  ;;  %v902_v53 = vpop.f32.mrb[21].mxu1 }
 0x263   : > { %v903_v54 = vadd.f32 %v2430_v0, %v902_v53  ;;  %v1818_v55 = vpop.f32.mrb[22].mxu1  ;;  %1851 = vmatprep.mubr.msk.bf16.mxu0 %vm803_vm1, %v1045_v50 }
 0x264   : > { %v914_v56 = vadd.f32 %v1818_v55, %v2430_v0  ;;  %v905_v57 = vpop.f32.mrb[23].mxu1  ;;  %1852 = vmatmul.mubr.msk.bf16.vlgmr.msra.gmra.mrb[16].mxu0 %vm803_vm1, %v1046_v49  ;;  %v1019_v60 = vmax.f32 %v911_v52, 0.0 }
 0x265   : > { %v906_v58 = vadd.f32 %v2430_v0, %v905_v57  ;;  %v1017_v63 = vmax.f32 %v903_v54, 0.0 }
 0x266   : > { %v1020_v61 = vmax.f32 %v914_v56, 0.0 }
 0x267   : > { %v1018_v3 = vmax.f32 %v906_v58, 0.0 }
 0x268   : > { %v1048_v5 = vpack.c.bf16 %v1020_v61, %v1019_v60 }
 0x269   : > { %v1047_v6 = vpack.c.bf16 %v1018_v3, %v1017_v63  ;;  %v1821_v7 = vpop.f32.mrb[24].mxu1 }
 0x26a   : > { %v927_v8 = vadd.f32 %v1821_v7, %v2430_v0  ;;  %v918_v9 = vpop.f32.mrb[25].mxu1 }
 0x26b   : > { %v919_v10 = vadd.f32 %v2430_v0, %v918_v9  ;;  %v1822_v11 = vpop.f32.mrb[26].mxu1  ;;  %1855 = vmatprep.mubr.msk.bf16.mxu0 %vm803_vm1, %v1047_v6 }
 0x26c   : > { %v930_v12 = vadd.f32 %v1822_v11, %v2430_v0  ;;  %v921_v13 = vpop.f32.mrb[27].mxu1  ;;  %1856 = vmatmul.mubr.msk.bf16.gmra.mrb[20].mxu0 %vm803_vm1, %v1048_v5  ;;  %v1023_v15 = vmax.f32 %v927_v8, 0.0 }
 0x26d   : > { %v922_v14 = vadd.f32 %v2430_v0, %v921_v13  ;;  %v1021_v17 = vmax.f32 %v919_v10, 0.0 }
 0x26e   : > { %v1024_v16 = vmax.f32 %v930_v12, 0.0 }
 0x26f   : > { %v1022_v18 = vmax.f32 %v922_v14, 0.0 }
 0x270   : > { %v1050_v19 = vpack.c.bf16 %v1024_v16, %v1023_v15 }
 0x271   : > { %v1049_v20 = vpack.c.bf16 %v1022_v18, %v1021_v17  ;;  %v1825_v21 = vpop.f32.mrb[28].mxu1 }
 0x272   : > { %v943_v22 = vadd.f32 %v1825_v21, %v2430_v0  ;;  %v934_v23 = vpop.f32.mrb[29].mxu1 }
 0x273   : > { %v935_v24 = vadd.f32 %v2430_v0, %v934_v23  ;;  %v1826_v25 = vpop.f32.mrb[30].mxu1  ;;  %1859 = vmatprep.mubr.msk.bf16.mxu0 %vm803_vm1, %v1049_v20 }
 0x274   : > { %v946_v26 = vadd.f32 %v1826_v25, %v2430_v0  ;;  %v937_v28 = vpop.f32.mrb[31].mxu1  ;;  %1860 = vmatmul.mubr.msk.bf16.gmra.mrb[24].mxu0 %vm803_vm1, %v1050_v19  ;;  %v1027_v33 = vmax.f32 %v943_v22, 0.0 }
 0x275   : > { %v938_v29 = vadd.f32 %v2430_v0, %v937_v28  ;;  %v1025_v62 = vmax.f32 %v935_v24, 0.0 }
 0x276   : > { %v1028_v59 = vmax.f32 %v946_v26, 0.0 }
 0x277   : > { %v1026_v27 = vmax.f32 %v938_v29, 0.0  ;;  %v401_v29 = vlaneseq }
 0x278   : > { %v1052_v30 = vpack.c.bf16 %v1028_v59, %v1027_v33  ;;  %v382_v59 = vpop.xlane.xlu0 %381 }
 0x279   : > { %v1051_v31 = vpack.c.bf16 %v1026_v27, %v1025_v62  ;;  %v1829_v32 = vpop.f32.mrb[32].mxu1  ;;  %v402_v33 = vand.u32 127, %v401_v29  ;;  %v404_v62 = vshrl.u32 %v401_v29, 7 }
 0x27a   : > { %v959_v34 = vadd.f32 %v1829_v32, %v2430_v0  ;;  %v950_v35 = vpop.f32.mrb[33].mxu1 }
 0x27b   : > { %v951_v36 = vadd.f32 %v2430_v0, %v950_v35  ;;  %v1830_v37 = vpop.f32.mrb[34].mxu1  ;;  %1863 = vmatprep.mubr.msk.bf16.mxu0 %vm803_vm1, %v1051_v31  ;;  %v407_v27 = vadd.s32 4294967288, %v402_v33  ;;  %v414_v31 = vadd.s32 4294967280, %v402_v33  ;;  %v405_v32 = vsub.s32 %v402_v33, %v404_v62 }
 0x27c   : > { %v962_v38 = vadd.f32 %v1830_v37, %v2430_v0  ;;  %v953_v39 = vpop.f32.mrb[35].mxu1  ;;  %1864 = vmatmul.mubr.msk.bf16.gmra.mrb[28].mxu0 %vm803_vm1, %v1052_v30  ;;  %v1031_v1 = vmax.f32 %v959_v34, 0.0  ;;  %v385_v30 = vpop.xlane.xlu1 %384  ;;  %v393_v34 = vmul.f32 0.00390625, %v382_v59  ;;  %v421_v37 = vadd.s32 4294967272, %v402_v33 }
 0x27d   : > { %v954_v2 = vadd.f32 %v2430_v0, %v953_v39  ;;  %v1029_v41 = vmax.f32 %v951_v36, 0.0  ;;  %v410_v35 = vsub.s32 %v407_v27, %v404_v62  ;;  %v394_v36 = vmul.f32 0.00390625, %v385_v30 }
 0x27e   : > { %v1032_v40 = vmax.f32 %v962_v38, 0.0  ;;  %v417_v38 = vsub.s32 %v414_v31, %v404_v62 }
 0x27f   : > { %v1030_v4 = vmax.f32 %v954_v2, 0.0 }
 0x280   : > { %v1054_v42 = vpack.c.bf16 %v1032_v40, %v1031_v1  ;;  %v391_v2 = vpop.xlane.xlu1 %390  ;;  %v406_v1 = vrot.slane %v393_v34, %v405_v32  ;;  %v411_v40 = vrot.slane %v394_v36, %v410_v35 }
 0x281   : > { %v1053_v43 = vpack.c.bf16 %v1030_v4, %v1029_v41  ;;  %v1833_v44 = vpop.f32.mrb[36].mxu1  ;;  %v424_v41 = vsub.s32 %v421_v37, %v404_v62  ;;  %v396_v4 = vmul.f32 0.00390625, %v391_v2 }
 0x282   : > { %v975_v45 = vadd.f32 %v1833_v44, %v2430_v0  ;;  %v966_v46 = vpop.f32.mrb[37].mxu1 }
 0x283   : > { %v967_v47 = vadd.f32 %v2430_v0, %v966_v46  ;;  %v1834_v48 = vpop.f32.mrb[38].mxu1  ;;  %1867 = vmatprep.mubr.msk.bf16.mxu0 %vm803_vm1, %v1053_v43  ;;  %v413_v43 = vsel %vm412_vm2, %v411_v40, %v406_v1  ;;  %v425_v44 = vrot.slane %v396_v4, %v424_v41  ;;  %v2483_v46 = vld [vmem:[%s2718_s6] ss:$0 sm:$0xff] }
 0x284   : > { %v1035_v49 = vmax.f32 %v975_v45, 0.0  ;;  %v978_v50 = vadd.f32 %v1834_v48, %v2430_v0  ;;  %v969_v51 = vpop.f32.mrb[39].mxu1  ;;  %1868 = vmatmul.mubr.msk.bf16.gmra.mrb[32].mxu0 %vm803_vm1, %v1054_v42 }
 0x285   : > { %v1033_v52 = vmax.f32 %v967_v47, 0.0  ;;  %v970_v53 = vadd.f32 %v2430_v0, %v969_v51 }
 0x286   : > { %v1036_v54 = vmax.f32 %v978_v50, 0.0 }
 0x287   : > { %v1034_v55 = vmax.f32 %v970_v53, 0.0 }
 0x288   : > { %v1056_v56 = vpack.c.bf16 %v1036_v54, %v1035_v49 }
 0x289   : > { %v1055_v57 = vpack.c.bf16 %v1034_v55, %v1033_v52  ;;  %v1837_v58 = vpop.f32.mrb[40].mxu1 }
 0x28a   : > { %v991_v60 = vadd.f32 %v1837_v58, %v2430_v0  ;;  %v982_v61 = vpop.f32.mrb[41].mxu1 }
 0x28b   : > { %v983_v63 = vadd.f32 %v2430_v0, %v982_v61  ;;  %v1838_v3 = vpop.f32.mrb[42].mxu1  ;;  %1871 = vmatprep.mubr.msk.bf16.mxu0 %vm803_vm1, %v1055_v57 }
 0x28c   : > { %v1039_v5 = vmax.f32 %v991_v60, 0.0  ;;  %v994_v6 = vadd.f32 %v1838_v3, %v2430_v0  ;;  %v985_v7 = vpop.f32.mrb[43].mxu1  ;;  %1872 = vmatmul.mubr.msk.bf16.gmra.mrb[36].mxu0 %vm803_vm1, %v1056_v56 }
 0x28d   : > { %v1037_v8 = vmax.f32 %v983_v63, 0.0  ;;  %v986_v9 = vadd.f32 %v2430_v0, %v985_v7 }
 0x28e   : > { %v1040_v10 = vmax.f32 %v994_v6, 0.0 }
 0x28f   : > { %v1038_v11 = vmax.f32 %v986_v9, 0.0 }
 0x290   : > { %v1058_v12 = vpack.c.bf16 %v1040_v10, %v1039_v5 }
 0x291   : > { %v1057_v13 = vpack.c.bf16 %v1038_v11, %v1037_v8  ;;  %v1841_v14 = vpop.f32.mrb[44].mxu1 }
 0x292   : > { %v1007_v15 = vadd.f32 %v1841_v14, %v2430_v0  ;;  %v998_v16 = vpop.f32.mrb[45].mxu1 }
 0x293   : > { %v999_v17 = vadd.f32 %v2430_v0, %v998_v16  ;;  %v1842_v18 = vpop.f32.mrb[46].mxu1  ;;  %1875 = vmatprep.mubr.msk.bf16.mxu0 %vm803_vm1, %v1057_v13 }
 0x294   : > { %v1043_v19 = vmax.f32 %v1007_v15, 0.0  ;;  %v1010_v20 = vadd.f32 %v1842_v18, %v2430_v0  ;;  %v1001_v21 = vpop.f32.mrb[47].mxu1  ;;  %1876 = vmatmul.mubr.msk.bf16.gmra.mrb[40].mxu0 %vm803_vm1, %v1058_v12 }
 0x295   : > { %v1041_v22 = vmax.f32 %v999_v17, 0.0  ;;  %v1002_v23 = vadd.f32 %v2430_v0, %v1001_v21  ;;  %v388_v0 = vpop.xlane.xlu0 %387 }
 0x296   : > { %v1044_v24 = vmax.f32 %v1010_v20, 0.0  ;;  %v395_v39 = vmul.f32 0.00390625, %v388_v0 }
 0x297   : > { %v1042_v25 = vmax.f32 %v1002_v23, 0.0 }
 0x298   : > { %v1060_v26 = vpack.c.bf16 %v1044_v24, %v1043_v19  ;;  %v418_v42 = vrot.slane %v395_v39, %v417_v38 }
 0x299   : > { %v1059_v28 = vpack.c.bf16 %v1042_v25, %v1041_v22 }
 0x29a   : > { %v420_v45 = vsel %vm419_vm3, %v418_v42, %v413_v43 }
 0x29b   : > { %1879 = vmatprep.mubr.msk.bf16.mxu0 %vm803_vm1, %v1059_v28  ;;  %v427_v47 = vsel %vm426_vm4, %v425_v44, %v420_v45 }
 0x29c   : > { %1880 = vmatmul.mubr.msk.bf16.gmra.mrb[44].mxu0 %vm803_vm1, %v1060_v26  ;;  %430 = vst.msk [vmem:[%s360_s17] sm:$0x1] %vm429_vm5, %v427_v47  ;;  %s1998_s17 = scalar_lea.vmem %s1997_s16, 32 }
 0x29d   : > { %p2000_p10 = scmp.lt.s32.totalorder %s1998_s17, %s1992_s28 }
 0x29f   : > { %p2001_p0 = por %p2000_p10, %p1999_p8 }
 0x2a1   : > { %p2002_p2 = pnand %p2001_p0, %p1995_p13 }
 0x337   : > { %v1853_v48 = vpop.f32.mrb[16].mxu0 }
 0x338   : > { %v1182_v49 = vpop.f32.mrb[17].mxu0  ;;  %v1191_v53 = vadd.f32 %v1853_v48, %v2483_v46 }
 0x339   : > { %v1183_v50 = vadd.f32 %v2483_v46, %v1182_v49  ;;  %v1854_v51 = vpop.f32.mrb[18].mxu0 }
 0x33a   : > { %v1185_v52 = vpop.f32.mrb[19].mxu0  ;;  %v1194_v56 = vadd.f32 %v1854_v51, %v2483_v46  ;;  %v1312_v60 = vsel %vm506_vm0, %v1191_v53, 0.0 }
 0x33b   : > { %v1186_v54 = vadd.f32 %v2483_v46, %v1185_v52  ;;  %1380 = vxpose.xlu0.b32.start [1/16] (narrow) %v1183_v50, 32  ;;  %v1309_v55 = vsel %vm506_vm0, %v1183_v50, 0.0 }
 0x33c   : > { %v1314_v5 = vsel %vm506_vm0, %v1194_v56, 0.0 }
 0x33d   : > { %v1310_v57 = vsel %vm506_vm0, %v1186_v54, 0.0 }
 0x33e   : > { %v1311_v58 = vadd.f32 %v1310_v57, %v1309_v55 }
 0x33f   : > { %v1857_v61 = vpop.f32.mrb[20].mxu0  ;;  %1381 = vxpose.xlu0.b32.cont [2/16] (narrow) %v1186_v54, 32 }
 0x340   : > { %v1313_v63 = vadd.f32 %v1312_v60, %v1311_v58  ;;  %v1198_v3 = vpop.f32.mrb[21].mxu0  ;;  %v1207_v10 = vadd.f32 %v1857_v61, %v2483_v46 }
 0x341   : > { %v1199_v6 = vadd.f32 %v2483_v46, %v1198_v3  ;;  %v1858_v7 = vpop.f32.mrb[22].mxu0 }
 0x342   : > { %v1315_v8 = vadd.f32 %v1314_v5, %v1313_v63  ;;  %v1201_v9 = vpop.f32.mrb[23].mxu0  ;;  %v1210_v14 = vadd.f32 %v1858_v7, %v2483_v46  ;;  %v1320_v17 = vsel %vm506_vm0, %v1207_v10, 0.0 }
 0x343   : > { %v1316_v11 = vsel %vm506_vm0, %v1199_v6, 0.0  ;;  %v1202_v12 = vadd.f32 %v2483_v46, %v1201_v9  ;;  %1382 = vxpose.xlu0.b32.cont [3/16] (narrow) %v1191_v53, 32 }
 0x344   : > { %v1317_v13 = vadd.f32 %v1316_v11, %v1315_v8  ;;  %v1322_v21 = vsel %vm506_vm0, %v1210_v14, 0.0 }
 0x345   : > { %v1318_v15 = vsel %vm506_vm0, %v1202_v12, 0.0 }
 0x346   : > { %v1319_v16 = vadd.f32 %v1318_v15, %v1317_v13 }
 0x347   : > { %v1861_v18 = vpop.f32.mrb[24].mxu0  ;;  %1383 = vxpose.xlu0.b32.cont [4/16] (narrow) %v1194_v56, 32 }
 0x348   : > { %v1321_v19 = vadd.f32 %v1320_v17, %v1319_v16  ;;  %v1214_v20 = vpop.f32.mrb[25].mxu0  ;;  %v1223_v26 = vadd.f32 %v1861_v18, %v2483_v46 }
 0x349   : > { %v1215_v22 = vadd.f32 %v2483_v46, %v1214_v20  ;;  %v1862_v23 = vpop.f32.mrb[26].mxu0 }
 0x34a   : > { %v1323_v24 = vadd.f32 %v1322_v21, %v1321_v19  ;;  %v1217_v25 = vpop.f32.mrb[27].mxu0  ;;  %v2510_v59 = vadd.f32 %v1862_v23, %v2483_v46  ;;  %v1328_v30 = vsel %vm506_vm0, %v1223_v26, 0.0 }
 0x34b   : > { %v1324_v28 = vsel %vm506_vm0, %v1215_v22, 0.0  ;;  %v1218_v29 = vadd.f32 %v2483_v46, %v1217_v25  ;;  %1384 = vxpose.xlu0.b32.cont [5/16] (narrow) %v1199_v6, 32 }
 0x34c   : > { %v1325_v33 = vadd.f32 %v1324_v28, %v1323_v24  ;;  %v1330_v35 = vsel %vm506_vm0, %v2510_v59, 0.0 }
 0x34d   : > { %v1326_v62 = vsel %vm506_vm0, %v1218_v29, 0.0 }
 0x34e   : > { %v1327_v27 = vadd.f32 %v1326_v62, %v1325_v33 }
 0x34f   : > { %v1865_v31 = vpop.f32.mrb[28].mxu0  ;;  %1385 = vxpose.xlu0.b32.cont [6/16] (narrow) %v1202_v12, 32 }
 0x350   : > { %v1329_v32 = vadd.f32 %v1328_v30, %v1327_v27  ;;  %v1230_v34 = vpop.f32.mrb[29].mxu0  ;;  %v2520_v39 = vadd.f32 %v1865_v31, %v2483_v46 }
 0x351   : > { %v2517_v36 = vadd.f32 %v2483_v46, %v1230_v34  ;;  %v1866_v0 = vpop.f32.mrb[30].mxu0 }
 0x352   : > { %v1331_v37 = vadd.f32 %v1330_v35, %v1329_v32  ;;  %v1233_v38 = vpop.f32.mrb[31].mxu0  ;;  %v2528_v41 = vadd.f32 %v1866_v0, %v2483_v46  ;;  %v1336_v43 = vsel %vm506_vm0, %v2520_v39, 0.0 }
 0x353   : > { %v1332_v2 = vsel %vm506_vm0, %v2517_v36, 0.0  ;;  %v2525_v1 = vadd.f32 %v2483_v46, %v1233_v38  ;;  %1386 = vxpose.xlu0.b32.cont [7/16] (narrow) %v1207_v10, 32 }
 0x354   : > { %v1333_v40 = vadd.f32 %v1332_v2, %v1331_v37  ;;  %v1338_v48 = vsel %vm506_vm0, %v2528_v41, 0.0 }
 0x355   : > { %v1334_v4 = vsel %vm506_vm0, %v2525_v1, 0.0 }
 0x356   : > { %v1335_v42 = vadd.f32 %v1334_v4, %v1333_v40 }
 0x357   : > { %v1869_v44 = vpop.f32.mrb[32].mxu0  ;;  %1387 = vxpose.xlu0.b32.cont [8/16] (narrow) %v1210_v14, 32 }
 0x358   : > { %v1337_v45 = vadd.f32 %v1336_v43, %v1335_v42  ;;  %v1246_v47 = vpop.f32.mrb[33].mxu0  ;;  %v1255_v53 = vadd.f32 %v1869_v44, %v2483_v46 }
 0x359   : > { %v1247_v49 = vadd.f32 %v2483_v46, %v1246_v47  ;;  %v1870_v50 = vpop.f32.mrb[34].mxu0 }
 0x35a   : > { %v1339_v51 = vadd.f32 %v1338_v48, %v1337_v45  ;;  %v1249_v52 = vpop.f32.mrb[35].mxu0  ;;  %v1258_v57 = vadd.f32 %v1870_v50, %v2483_v46  ;;  %v1344_v61 = vsel %vm506_vm0, %v1255_v53, 0.0 }
 0x35b   : > { %v1340_v54 = vsel %vm506_vm0, %v1247_v49, 0.0  ;;  %v1250_v55 = vadd.f32 %v2483_v46, %v1249_v52  ;;  %1412 = vxpose.xlu1.b32.start [1/16] (narrow) %v1247_v49, 32  ;;  %1388 = vxpose.xlu0.b32.cont [9/16] (narrow) %v1215_v22, 32 }
 0x35c   : > { %v1341_v56 = vadd.f32 %v1340_v54, %v1339_v51  ;;  %v1346_v6 = vsel %vm506_vm0, %v1258_v57, 0.0 }
 0x35d   : > { %v1342_v58 = vsel %vm506_vm0, %v1250_v55, 0.0 }
 0x35e   : > { %v1343_v60 = vadd.f32 %v1342_v58, %v1341_v56 }
 0x35f   : > { %v1873_v63 = vpop.f32.mrb[36].mxu0  ;;  %1413 = vxpose.xlu1.b32.cont [2/16] (narrow) %v1250_v55, 32  ;;  %1389 = vxpose.xlu0.b32.cont [10/16] (narrow) %v1218_v29, 32 }
 0x360   : > { %v1345_v3 = vadd.f32 %v1344_v61, %v1343_v60  ;;  %v1262_v5 = vpop.f32.mrb[37].mxu0  ;;  %v2546_v11 = vadd.f32 %v1873_v63, %v2483_v46 }
 0x361   : > { %v1263_v7 = vadd.f32 %v2483_v46, %v1262_v5  ;;  %v1874_v8 = vpop.f32.mrb[38].mxu0 }
 0x362   : > { %v1347_v9 = vadd.f32 %v1346_v6, %v1345_v3  ;;  %v1265_v10 = vpop.f32.mrb[39].mxu0  ;;  %v2551_v15 = vadd.f32 %v1874_v8, %v2483_v46  ;;  %v1352_v18 = vsel %vm506_vm0, %v2546_v11, 0.0 }
 0x363   : > { %v1348_v12 = vsel %vm506_vm0, %v1263_v7, 0.0  ;;  %v1266_v13 = vadd.f32 %v2483_v46, %v1265_v10  ;;  %1414 = vxpose.xlu1.b32.cont [3/16] (narrow) %v1255_v53, 32  ;;  %1390 = vxpose.xlu0.b32.cont [11/16] (narrow) %v1223_v26, 32 }
 0x364   : > { %v1349_v14 = vadd.f32 %v1348_v12, %v1347_v9  ;;  %v1354_v22 = vsel %vm506_vm0, %v2551_v15, 0.0 }
 0x365   : > { %v1350_v16 = vsel %vm506_vm0, %v1266_v13, 0.0 }
 0x366   : > { %v1351_v17 = vadd.f32 %v1350_v16, %v1349_v14 }
 0x367   : > { %v1877_v19 = vpop.f32.mrb[40].mxu0  ;;  %1415 = vxpose.xlu1.b32.cont [4/16] (narrow) %v1258_v57, 32  ;;  %1391 = vxpose.xlu0.b32.cont [12/16] (narrow) %v2510_v59, 32 }
 0x368   : > { %v1353_v20 = vadd.f32 %v1352_v18, %v1351_v17  ;;  %v1278_v21 = vpop.f32.mrb[41].mxu0  ;;  %v2571_v23 = vadd.f32 %v1877_v19, %v2483_v46 }
 0x369   : > { %v2574_v24 = vadd.f32 %v2483_v46, %v1278_v21  ;;  %v1878_v25 = vpop.f32.mrb[42].mxu0 }
 0x36a   : > { %v1355_v26 = vadd.f32 %v1354_v22, %v1353_v20  ;;  %v1281_v28 = vpop.f32.mrb[43].mxu0 }
 0x36b   : > { %2005 = shalt.err (!%p2002_p2)
}
 0x36c   : > { %s2006_s27 = scalar_lea.hbm %s2564_s24, 16  ;;  %s2010_s20 = scalar_lea.hbm %s2720_s8, 32 }
 0x36d   : > { %p2007_p4 = scmp.ne.s32.totalorder %s2564_s24, %s2006_s27  ;;  %p2011_p9 = scmp.lt.u32.totalorder %s2564_s24, %s2720_s8 }
 0x36e   : > { %p2012_p1 = scmp.lt.u32.totalorder %s2010_s20, %s2006_s27  ;;  %p2014_p6 = scmp.lt.u32.totalorder %s2006_s27, %s2564_s24 }
 0x36f   : > { %p2008_p5 = pnand %p2007_p4, %p2730_p11 }
 0x370   : > { %p2013_p3 = por %p2012_p1, %p2011_p9 }
 0x371   : > { %p2009_p7 = pneg %p2008_p5 }
 0x372   : > { %p2015_p12 = por %p2014_p6, %p2013_p3 }
 0x374   : > { %p2016_p13 = pnand %p2015_p12, %p2009_p7 }
 0x376   : > { %2019 = shalt.err (!%p2016_p13)
}
 0x377   : > { %1890 = dma.vmem_to_hbm [thread:$0]  (%p2730_p11), %s2576_s19, 16, %s2564_s24, %s2578_s14   ;;  %v1356_v29 = vsel %vm506_vm0, %v2574_v24, 0.0  ;;  %v1290_v33 = vadd.f32 %v1878_v25, %v2483_v46  ;;  %v1282_v59 = vadd.f32 %v2483_v46, %v1281_v28  ;;  %1416 = vxpose.xlu1.b32.cont [5/16] (narrow) %v1263_v7, 32  ;;  %1392 = vxpose.xlu0.b32.cont [13/16] (narrow) %v2517_v36, 32  ;;  %v1360_v27 = vsel %vm506_vm0, %v2571_v23, 0.0  ;;  %v1881_v34 = vpop.f32.mrb[44].mxu0 }
 0x378   : > { %v1357_v62 = vadd.f32 %v1356_v29, %v1355_v26  ;;  %v1294_v0 = vpop.f32.mrb[45].mxu0  ;;  %v1303_v37 = vadd.f32 %v1881_v34, %v2483_v46  ;;  %s366_s26 = scalar_lea.vmem [#allocation8], %s2284_s29  ;;  %s2731_s19 = sshll.u32 %s2199_s13, 4 }
 0x379   : > { %v1358_v30 = vsel %vm506_vm0, %v1282_v59, 0.0  ;;  %v1362_v32 = vsel %vm506_vm0, %v1290_v33, 0.0  ;;  %v1295_v38 = vadd.f32 %v2483_v46, %v1294_v0  ;;  %v1882_v36 = vpop.f32.mrb[46].mxu0  ;;  %s1503_s24 = sshll.u32 %s366_s26, 4  ;;  %s2632_s27 = scalar_lea.hbm %s2721_s9, %s2731_s19  ;;  %s2634_s24 = int_to_ptr.vmem [resolvable:$true] %s1503_s24 }
 0x37a   : > { %v1359_v31 = vadd.f32 %v1358_v30, %v1357_v62  ;;  %v1297_v40 = vpop.f32.mrb[47].mxu0  ;;  %v1306_v42 = vadd.f32 %v1882_v36, %v2483_v46  ;;  %v1368_v44 = vsel %vm506_vm0, %v1303_v37, 0.0  ;;  %s2020_s25 = scalar_lea.vmem %s2634_s24, 16  ;;  %s2124_s23 = smov [#allocation8]  }
 0x37b   : > { %1417 = vxpose.xlu1.b32.cont [6/16] (narrow) %v1266_v13, 32  ;;  %1393 = vxpose.xlu0.b32.cont [14/16] (narrow) %v2525_v1, 32  ;;  %v1364_v4 = vsel %vm506_vm0, %v1295_v38, 0.0  ;;  %v1298_v43 = vadd.f32 %v2483_v46, %v1297_v40  ;;  %p2021_p8 = scmp.ne.s32.totalorder %s2634_s24, %s2020_s25  ;;  %s2024_s20 = sshll.u32 %s2124_s23, 4  ;;  %s2025_s20 = int_to_ptr.vmem [resolvable:$false] %s2024_s20 }
 0x37c   : > { %v1361_v35 = vadd.f32 %v1360_v27, %v1359_v31  ;;  %v1370_v48 = vsel %vm506_vm0, %v1306_v42, 0.0  ;;  %s2026_s16 = scalar_lea.vmem %s2025_s20, 32  ;;  %p2027_p2 = scmp.lt.s32.totalorder %s2634_s24, %s2025_s20 }
 0x37d   : > { %v1366_v45 = vsel %vm506_vm0, %v1298_v43, 0.0  ;;  %p2022_p10 = pnand %p2021_p8, %p2730_p11  ;;  %p2028_p4 = scmp.lt.s32.totalorder %s2026_s16, %s2020_s25 }
 0x37e   : > { %v1363_v2 = vadd.f32 %v1362_v32, %v1361_v35 }
 0x37f   : > { %1418 = vxpose.xlu1.b32.cont [7/16] (narrow) %v2546_v11, 32  ;;  %1394 = vxpose.xlu0.b32.cont [15/16] (narrow) %v2520_v39, 32  ;;  %p2023_p0 = pneg %p2022_p10  ;;  %p2029_p5 = por %p2028_p4, %p2027_p2 }
 0x380   : > { %v1365_v1 = vadd.f32 %v1364_v4, %v1363_v2 }
 0x381   : > { %p2030_p7 = pnand %p2029_p5, %p2023_p0 }
 0x382   : > { %v1367_v47 = vadd.f32 %v1366_v45, %v1365_v1 }
 0x383   : > { %1419 = vxpose.xlu1.b32.cont [8/16] (narrow) %v2551_v15, 32  ;;  %1395 = vxpose.xlu0.b32.end [16/16] (narrow) %v2528_v41, 32 }
 0x384   : > { %v1369_v49 = vadd.f32 %v1368_v44, %v1367_v47 }
 0x386   : > { %v1371_v46 = vadd.f32 %v1370_v48, %v1369_v49 }
 0x387   : > { %1420 = vxpose.xlu1.b32.cont [9/16] (narrow) %v2574_v24, 32 }
 0x388   : > { %v1372_v50 = vrot.slane %v1371_v46, 4 }
 0x38a   : > { %v1373_v39 = vadd.f32 %v1372_v50, %v1371_v46 }
 0x38b   : > { %1421 = vxpose.xlu1.b32.cont [10/16] (narrow) %v1282_v59, 32 }
 0x38c   : > { %v1374_v51 = vrot.slane %v1373_v39, 2 }
 0x38e   : > { %v1375_v52 = vadd.f32 %v1374_v51, %v1373_v39 }
 0x38f   : > { %1422 = vxpose.xlu1.b32.cont [11/16] (narrow) %v2571_v23, 32 }
 0x390   : > { %v1376_v53 = vrot.slane %v1375_v52, 1 }
 0x392   : > { %v1377_v54 = vadd.f32 %v1376_v53, %v1375_v52 }
 0x393   : > { %1423 = vxpose.xlu1.b32.cont [12/16] (narrow) %v1290_v33, 32 }
 0x394   : > { %v1378_v55 = vmul.f32 0.00390625, %v1377_v54 }
 0x396   : > { %1379 = vst.msk [vmem:[%s366_s26] sm:$0x1] %vm429_vm5, %v1378_v55 }
 0x397   : > { %1424 = vxpose.xlu1.b32.cont [13/16] (narrow) %v1295_v38, 32 }
 0x398   : > { %2033 = shalt.err (!%p2030_p7)
}
 0x399   : > { %s2034_s26 = scalar_lea.hbm %s2632_s27, 16  ;;  %s2038_s17 = scalar_lea.hbm %s2721_s9, 32 }
 0x39a   : > { %p2035_p9 = scmp.ne.s32.totalorder %s2632_s27, %s2034_s26  ;;  %p2039_p6 = scmp.lt.u32.totalorder %s2632_s27, %s2721_s9 }
 0x39b   : > { %p2040_p12 = scmp.lt.u32.totalorder %s2038_s17, %s2034_s26  ;;  %p2042_p8 = scmp.lt.u32.totalorder %s2034_s26, %s2632_s27 }
 0x39c   : > { %p2036_p1 = pnand %p2035_p9, %p2730_p11 }
 0x39d   : > { %p2041_p13 = por %p2040_p12, %p2039_p6 }
 0x39e   : > { %p2037_p3 = pneg %p2036_p1 }
 0x39f   : > { %p2043_p10 = por %p2042_p8, %p2041_p13 }
 0x3a1   : > { %p2044_p0 = pnand %p2043_p10, %p2037_p3 }
 0x3a3   : > { %2047 = shalt.err (!%p2044_p0)
}
 0x3a4   : > { %1891 = dma.vmem_to_hbm [thread:$0]  (%p2730_p11), %s2634_s24, 16, %s2632_s27, %s2578_s14   ;;  %1425 = vxpose.xlu1.b32.cont [14/16] (narrow) %v1298_v43, 32 }
 0x3a5   : > { %s1634_s25 = sshll.u32 %s2284_s29, 6  ;;  %s1708_s24 = sshll.u32 %s2199_s13, 10 }
 0x3a6   : > { %s354_s16 = scalar_lea.vmem [#allocation5], %s1634_s25  ;;  %s2666_s19 = scalar_lea.hbm %s2719_s7, %s1708_s24 }
 0x3a7   : > { %s1474_s14 = sshll.u32 %s354_s16, 4  ;;  %s1453_s28 = scalar_lea.sflag [#allocation4], %s2284_s29  ;;  %s2661_s14 = int_to_ptr.vmem [resolvable:$true] %s1474_s14 }
 0x3a8   : > { %1426 = vxpose.xlu1.b32.cont [15/16] (narrow) %v1303_v37, 32  ;;  %s2048_s17 = scalar_lea.vmem %s2661_s14, 1024  ;;  %s2125_s13 = smov [#allocation5]  }
 0x3a9   : > { %p2049_p2 = scmp.ne.s32.totalorder %s2661_s14, %s2048_s17  ;;  %s2052_s23 = sshll.u32 %s2125_s13, 4  ;;  %s2053_s23 = int_to_ptr.vmem [resolvable:$false] %s2052_s23 }
 0x3aa   : > { %s2054_s20 = scalar_lea.vmem %s2053_s23, 2048  ;;  %p2055_p7 = scmp.lt.s32.totalorder %s2661_s14, %s2053_s23 }
 0x3ab   : > { %p2050_p4 = pnand %p2049_p2, %p2730_p11  ;;  %p2056_p9 = scmp.lt.s32.totalorder %s2054_s20, %s2048_s17 }
 0x3ac   : > { %1427 = vxpose.xlu1.b32.end [16/16] (narrow) %v1306_v42, 32 }
 0x3ad   : > { %p2051_p5 = pneg %p2050_p4  ;;  %p2057_p1 = por %p2056_p9, %p2055_p7 }
 0x3af   : > { %p2058_p3 = pnand %p2057_p1, %p2051_p5 }
 0x3c7   : > { %v1396_v41 = vpop.trf.xlu0 }
 0x3c8   : > { %1444 = vst [vmem:[%s354_s16] sm:$0xff] %v1396_v41 }
 0x3cb   : > { %v1397_v56 = vpop.trf.xlu0 }
 0x3cc   : > { %1446 = vst [vmem:[%s354_s16 + $0x10] sm:$0xff] %v1397_v56 }
 0x3cf   : > { %v1398_v57 = vpop.trf.xlu0 }
 0x3d0   : > { %1448 = vst [vmem:[%s354_s16 + $0x20] sm:$0xff] %v1398_v57 }
 0x3d3   : > { %v1399_v58 = vpop.trf.xlu0 }
 0x3d4   : > { %1450 = vst [vmem:[%s354_s16 + $0x30] sm:$0xff] %v1399_v58 }
 0x3f0   : > { %v1428_v60 = vpop.trf.xlu1 }
 0x3f1   : > { %1445 = vst [vmem:[%s354_s16 + $0x8] sm:$0xff] %v1428_v60 }
 0x3f4   : > { %v1429_v61 = vpop.trf.xlu1 }
 0x3f5   : > { %1447 = vst [vmem:[%s354_s16 + $0x18] sm:$0xff] %v1429_v61 }
 0x3f8   : > { %v1430_v63 = vpop.trf.xlu1 }
 0x3f9   : > { %1449 = vst [vmem:[%s354_s16 + $0x28] sm:$0xff] %v1430_v63 }
 0x3fc   : > { %v1431_v3 = vpop.trf.xlu1 }
 0x3fd   : > { %1451 = vst [vmem:[%s354_s16 + $0x38] sm:$0xff] %v1431_v3 }
 0x3fe   : > { %2061 = shalt.err (!%p2058_p3)
}
 0x3ff   : > { %s2062_s25 = scalar_lea.hbm %s2666_s19, 1024  ;;  %s2066_s27 = scalar_lea.hbm %s2719_s7, 2048 }
 0x400   : > { %p2063_p6 = scmp.ne.s32.totalorder %s2666_s19, %s2062_s25  ;;  %p2067_p8 = scmp.lt.u32.totalorder %s2666_s19, %s2719_s7 }
 0x401   : > { %p2068_p10 = scmp.lt.u32.totalorder %s2066_s27, %s2062_s25  ;;  %p2070_p2 = scmp.lt.u32.totalorder %s2062_s25, %s2666_s19 }
 0x402   : > { %p2064_p12 = pnand %p2063_p6, %p2730_p11 }
 0x403   : > { %p2069_p0 = por %p2068_p10, %p2067_p8 }
 0x404   : > { %p2065_p13 = pneg %p2064_p12 }
 0x405   : > { %p2071_p4 = por %p2070_p2, %p2069_p0 }
 0x407   : > { %p2072_p5 = pnand %p2071_p4, %p2065_p13 }
 0x409   : > { %2075 = shalt.err (!%p2072_p5)
}
 0x40a   : > { %s2126_s17 = smov 256   ;;  %s2127_s23 = smov 16  }
 0x40b   : > { %1889 = dma.vmem_to_hbm [thread:$0]  (%p2730_p11), %s2661_s14, 1024, %s2666_s19, %s1453_s28, %s2126_s17, %s2126_s17, %s2127_s23  }
 0x40c PF: > { %s1515_s20 = sand.u32 1, %s2106_s30   ;;  %p2732_p7 = scmp.ne.s32.totalorder %s2728_s22, 0 }
 0x40d   : > { %p2733_p9 = scmp.ge.s32.totalorder %s2118_s12, 2  ;;  %s1516_s25 = scalar_lea.sflag [#allocation4], %s1515_s20 }
 0x40f   : > { %p1900_p1 = pnand %p2733_p9, %p2732_p7 }
 0x411   : > { %2097 = dma.done.wait (!%p1900_p1), %s1516_s25, 1024  }
 0x412   : > { %2099 = vsyncadd (!%p1900_p1), %s1516_s25, 4294966272  ;;  %s2734_s16 = sadd.s32 4294967294, %s2118_s12  }
 0x413   : > { %s1524_s24 = sand.u32 1, %s2734_s16  }
 0x414   : > { %s1525_s27 = scalar_lea.sflag [#allocation7], %s1524_s24 }
 0x415   : > { %2101 = dma.done.wait (!%p1900_p1), %s1525_s27, 32  }
 0x416   : > { %2103 = vsyncadd (!%p1900_p1), %s1525_s27, 4294967264  ;;  %p26_p11 = scmp.ge.s32.totalorder %s2203_s15, 4   ;;  %s2735_s30 = smov %s2110_s10 }
 0x417   : > { %s2736_s10 = smov %s2114_s11  ;;  %s2737_s11 = smov %s2215_s18 }
 0x418   : > { %s2738_s12 = smov %s2203_s15  ;;  %28 = sbr.rel (!%p26_p11) target bundleno = 7 (0x7), region = 125 }
 0x41f   :  { %1537 = vsyncpa [#allocation3], 1 }
 0x420   :  { %1539 = vsyncpa [#allocation3 + $0x1], 1 }
 0x421   :  { %1540 = vsyncpa [#allocation4], 1 }
 0x422   :  { %1542 = vsyncpa [#allocation4 + $0x1], 1 }
 0x423   :  { %1543 = vsyncpa [#allocation7], 1 }
 0x424   :  { %1545 = vsyncpa [#allocation7 + $0x1], 1 }

</bundles_post_ra>
